<compile_context>
chip_gen: v7x
topology: tpu7x:2x2x1
jax: 0.10.0
libtpu: 0.0.40
codegen_flags: <defaults>
</compile_context>

<pallas_src>
import functools
import math

import jax
import jax.numpy as jnp
from jax import lax
from jax.experimental import pallas as pl
from jax.experimental.pallas import tpu as pltpu


# ------------------------- fused Pallas kernel -------------------------

def encoder_kernel(x2d_ref, h0_ref, c0_ref, *refs,
                   num_layers, hidden_size, seq_len, batch):
    """Fused Encoder forward.

    x2d_ref : (S*B, D_in)  time-major rows (row t*B + b  ==  x[b, t, :])
    h0_ref  : (L, B, H)    c0_ref : (L, B, H)
    refs    : [wih_t_0, whh_t_0, ..., wih_t_{L-1}, whh_t_{L-1},  # LSTM, pre-transposed,
               #                                                   gate cols = [i|f|o|g]
               w_lin3 (S,H,H), b_lin (1,H),                       # flatten + linear
               w_qkv_t (H,3H), b_qkv (1,3H), wo_t (H,H), bo (1,H),# attention (q/k/v fused)
               out_ref (B,H), hn_ref (L,B,H), cn_ref (L,B,H)]
    """
    H, S, B = hidden_size, seq_len, batch
    n_w = 2 * num_layers + 6
    w = refs[:n_w]
    out_ref, hn_ref, cn_ref = refs[n_w:]

    # ---- layer 0 input projection: one batched MXU matmul for all timesteps ----
    gi0_all = jnp.dot(x2d_ref[...], w[0][...],
                      preferred_element_type=jnp.float32)          # (S*B, 4H)
    gi = [gi0_all[t * B:(t + 1) * B, :] for t in range(S)]          # each (B, 4H)

    xs = None  # per-timestep hidden states of the previous layer
    for l in range(num_layers):                                     # static -> unrolled
        whh_t = w[2 * l + 1][...]                                   # (H, 4H)
        if l > 0:
            # Per-timestep input projection for this layer.  Kept per-step on
            # purpose: projection t only depends on layer l-1's step-t output,
            # so it overlaps layer l-1's serial recurrence tail.
            wih_t = w[2 * l][...]                                   # (H, 4H)
            gi = [jnp.dot(x_t, wih_t, preferred_element_type=jnp.float32)
                  for x_t in xs]

        h = h0_ref[l]                                               # (B, H)
        c = c0_ref[l]                                               # (B, H)
        xs = []
        for t in range(S):                                          # static -> unrolled
            gates = gi[t] + jnp.dot(h, whh_t,
                                    preferred_element_type=jnp.float32)  # (B, 4H)
            # Gate columns pre-permuted in the wrapper to [i | f | o | g]:
            # the three sigmoids fuse into a single EUP op over 3H lanes.
            ifo = jax.nn.sigmoid(gates[:, 0:3 * H])
            g_g = jnp.tanh(gates[:, 3 * H:4 * H])
            i_g = ifo[:, 0:H]
            f_g = ifo[:, H:2 * H]
            o_g = ifo[:, 2 * H:3 * H]
            c = f_g * c + i_g * g_g
            h = o_g * jnp.tanh(c)
            xs.append(h)
        hn_ref[l] = h
        cn_ref[l] = c

    # ---- x = flatten(out, 1); x = linear(x) ----
    # Equivalent to (B, S*H) @ W_lin^T + b, computed as per-timestep (B,H)x(H,H)
    # partial sums: no in-kernel reshape of activations, and each partial can
    # start as soon as the last layer finishes step t.
    w_lin3_ref = w[2 * num_layers]                                  # (S, H, H): [t, in, out]
    b_lin = w[2 * num_layers + 1][...]                              # (1, H)
    y = b_lin
    for t in range(S):
        y = y + jnp.dot(xs[t], w_lin3_ref[t],
                        preferred_element_type=jnp.float32)         # (B, H)

    # ---- SelfAttention (a = q = k = v = H, h = 1), fused q/k/v projection ----
    w_qkv_t = w[2 * num_layers + 2][...]                            # (H, 3H)
    b_qkv = w[2 * num_layers + 3][...]                              # (1, 3H)
    wo_t = w[2 * num_layers + 4][...]                               # (H, H)
    bo = w[2 * num_layers + 5][...]                                 # (1, H)

    qkv = jnp.dot(y, w_qkv_t, preferred_element_type=jnp.float32) + b_qkv   # (B, 3H)
    q_att = qkv[:, 0:H]                                             # (B, H)
    k_att = qkv[:, H:2 * H]                                         # (B, H)
    v_att = qkv[:, 2 * H:3 * H]                                     # (B, H)

    # att = (k^T @ q) / sqrt(H); softmax over the last axis.
    att = jnp.dot(k_att.T, q_att,
                  preferred_element_type=jnp.float32) * (1.0 / math.sqrt(H))  # (H, H)
    att = att - jnp.max(att, axis=-1, keepdims=True)
    att = jnp.exp(att)
    att = att / jnp.sum(att, axis=-1, keepdims=True)
    # TODO(synk): nn.Dropout(p=0.1) on `att` is an eval-mode identity here (no RNG mask).

    out = jnp.dot(v_att, att, preferred_element_type=jnp.float32)        # (B, H)
    out_ref[...] = jnp.dot(out, wo_t,
                           preferred_element_type=jnp.float32) + bo      # (B, H)


# ------------------------- wrapper -------------------------

def _permute_gate_rows(w):
    """torch LSTM gate row order [i|f|g|o] -> kernel order [i|f|o|g]."""
    H = w.shape[0] // 4
    return jnp.concatenate([w[0:2 * H], w[3 * H:4 * H], w[2 * H:3 * H]], axis=0)


def encoder_forward(params, x, h0, c0):
    """Matches Encoder.forward: returns (att_out (B,H), hn (L,B,H), cn (L,B,H))."""
    B, S, D_in = x.shape
    L, _, H = h0.shape

    # Layout plumbing done once, outside the kernel (cheap XLA ops).
    x2d = jnp.swapaxes(x, 0, 1).reshape(S * B, D_in)     # time-major rows t*B + b
    args = [x2d, h0, c0]
    for p in params["lstm"]:
        args.append(_permute_gate_rows(p["w_ih"]).T)     # (D_in, 4H), lane-dense, [i|f|o|g]
        args.append(_permute_gate_rows(p["w_hh"]).T)     # (H, 4H),    lane-dense, [i|f|o|g]
    args.append(params["w_lin"].T.reshape(S, H, H))      # [t, in, out]
    args.append(params["b_lin"].reshape(1, H))
    w_qkv_t = jnp.concatenate(
        [params["w_q"].T, params["w_k"].T, params["w_v"].T], axis=1)      # (H, 3H)
    b_qkv = jnp.concatenate(
        [params["b_q"], params["b_k"], params["b_v"]]).reshape(1, 3 * H)  # (1, 3H)
    args.append(w_qkv_t)
    args.append(b_qkv)
    args.append(params["w_o"].T)                         # (H, H)
    args.append(params["b_o"].reshape(1, H))             # (1, H)

    vmem = pl.BlockSpec(memory_space=pltpu.MemorySpace.VMEM)
    kernel = functools.partial(encoder_kernel, num_layers=L, hidden_size=H,
                               seq_len=S, batch=B)
    out, hn, cn = pl.pallas_call(
        kernel,
        out_shape=(jax.ShapeDtypeStruct((B, H), jnp.float32),
                   jax.ShapeDtypeStruct((L, B, H), jnp.float32),
                   jax.ShapeDtypeStruct((L, B, H), jnp.float32)),
        in_specs=[vmem] * len(args),
        out_specs=(vmem, vmem, vmem),
    )(*args)
    return out, hn, cn


# ------------------------- deterministic parameter init (torch-style shapes) -------------------------

def init_params(key, input_size, hidden_size, num_layers, data_length):
    H = hidden_size
    ks = list(jax.random.split(key, 2 * num_layers + 10))
    kw = 1.0 / math.sqrt(H)
    lstm = []
    for l in range(num_layers):
        d_in = input_size if l == 0 else H
        lstm.append({
            "w_ih": jax.random.uniform(ks[2 * l], (4 * H, d_in), jnp.float32, -kw, kw),
            "w_hh": jax.random.uniform(ks[2 * l + 1], (4 * H, H), jnp.float32, -kw, kw),
        })
    params = {"lstm": lstm}

    def linear(k1, k2, n_out, n_in):
        b = 1.0 / math.sqrt(n_in)
        return (jax.random.uniform(k1, (n_out, n_in), jnp.float32, -b, b),
                jax.random.uniform(k2, (n_out,), jnp.float32, -b, b))

    off = 2 * num_layers
    params["w_lin"], params["b_lin"] = linear(ks[off + 0], ks[off + 1], H, H * data_length)
    params["w_q"], params["b_q"] = linear(ks[off + 2], ks[off + 3], H, H)
    params["w_k"], params["b_k"] = linear(ks[off + 4], ks[off + 5], H, H)
    params["w_v"], params["b_v"] = linear(ks[off + 6], ks[off + 7], H, H)
    params["w_o"], params["b_o"] = linear(ks[off + 8], ks[off + 9], H, H)
    return params


# ------------------------- pure-JAX reference (sanity check) -------------------------

def encoder_ref(params, x, h0, c0):
    B, S, _ = x.shape
    H = h0.shape[-1]
    inp = x
    hs, cs = [], []
    for l, p in enumerate(params["lstm"]):
        w_ih, w_hh = p["w_ih"], p["w_hh"]

        def step(carry, x_t):
            h, c = carry
            g = x_t @ w_ih.T + h @ w_hh.T
            i = jax.nn.sigmoid(g[:, :H])
            f = jax.nn.sigmoid(g[:, H:2 * H])
            gg = jnp.tanh(g[:, 2 * H:3 * H])
            o = jax.nn.sigmoid(g[:, 3 * H:])
            c_new = f * c + i * gg
            h_new = o * jnp.tanh(c_new)
            return (h_new, c_new), h_new

        (hT, cT), out = lax.scan(step, (h0[l], c0[l]), jnp.swapaxes(inp, 0, 1))
        inp = jnp.swapaxes(out, 0, 1)
        hs.append(hT)
        cs.append(cT)

    flat = inp.reshape(B, S * H)
    y = flat @ params["w_lin"].T + params["b_lin"]
    q = y @ params["w_q"].T + params["b_q"]
    k = (y @ params["w_k"].T + params["b_k"]).T
    v = y @ params["w_v"].T + params["b_v"]
    att = jax.nn.softmax((k @ q) / math.sqrt(H), axis=-1)     # dropout = identity (eval)
    out = (v @ att) @ params["w_o"].T + params["b_o"]
    return out, jnp.stack(hs, axis=0), jnp.stack(cs, axis=0)


# ------------------------- main -------------------------

if __name__ == "__main__":
    data_length, input_size, hidden_size, num_layers = 8, 4, 32, 2
    B = 2

    key = jax.random.PRNGKey(0)
    kp, kx, kh, kc = jax.random.split(key, 4)
    params = init_params(kp, input_size, hidden_size, num_layers, data_length)

    x = jax.random.normal(kx, (B, data_length, input_size), jnp.float32)
    h0 = jax.random.normal(kh, (num_layers, B, hidden_size), jnp.float32)
    c0 = jax.random.normal(kc, (num_layers, B, hidden_size), jnp.float32)

    out, hn, cn = jax.jit(encoder_forward)(params, x, h0, c0)
    out, hn, cn = jax.block_until_ready((out, hn, cn))

    out_r, hn_r, cn_r = encoder_ref(params, x, h0, c0)
    assert out.shape == (B, hidden_size)
    assert hn.shape == (num_layers, B, hidden_size)
    assert cn.shape == (num_layers, B, hidden_size)
    assert jnp.allclose(out, out_r, atol=1e-4, rtol=1e-4), float(jnp.max(jnp.abs(out - out_r)))
    assert jnp.allclose(hn, hn_r, atol=1e-4, rtol=1e-4), float(jnp.max(jnp.abs(hn - hn_r)))
    assert jnp.allclose(cn, cn_r, atol=1e-4, rtol=1e-4), float(jnp.max(jnp.abs(cn - cn_r)))

    print("KERNEL_OK")
</pallas_src>

<mosaic_0001>
module attributes {stable_mosaic.version = 11 : i64} {
  func.func @encoder_kernel(%arg0: memref<16x4xf32, #tpu.memory_space<vmem>>, %arg1: memref<2x2x32xf32, #tpu.memory_space<vmem>>, %arg2: memref<2x2x32xf32, #tpu.memory_space<vmem>>, %arg3: memref<4x128xf32, #tpu.memory_space<vmem>>, %arg4: memref<32x128xf32, #tpu.memory_space<vmem>>, %arg5: memref<32x128xf32, #tpu.memory_space<vmem>>, %arg6: memref<32x128xf32, #tpu.memory_space<vmem>>, %arg7: memref<8x32x32xf32, #tpu.memory_space<vmem>>, %arg8: memref<1x32xf32, #tpu.memory_space<vmem>>, %arg9: memref<32x96xf32, #tpu.memory_space<vmem>>, %arg10: memref<1x96xf32, #tpu.memory_space<vmem>>, %arg11: memref<32x32xf32, #tpu.memory_space<vmem>>, %arg12: memref<1x32xf32, #tpu.memory_space<vmem>>, %arg13: memref<2x32xf32, #tpu.memory_space<vmem>>, %arg14: memref<2x2x32xf32, #tpu.memory_space<vmem>>, %arg15: memref<2x2x32xf32, #tpu.memory_space<vmem>>) attributes {dimension_semantics = [], scalar_prefetch = 0 : i64, scratch_operands = 0 : i64, tpu.core_type = #tpu.core_type<tc>} {
    %c0 = arith.constant 0 : index
    %c0_0 = arith.constant 0 : index
    %0 = vector.load %arg0[%c0, %c0_0] : memref<16x4xf32, #tpu.memory_space<vmem>>, vector<16x4xf32>
    %c0_1 = arith.constant 0 : index
    %c0_2 = arith.constant 0 : index
    %1 = vector.load %arg3[%c0_1, %c0_2] : memref<4x128xf32, #tpu.memory_space<vmem>>, vector<4x128xf32>
    %cst = arith.constant dense<0.000000e+00> : vector<16x128xf32>
    %2 = tpu.matmul %0, %1, %cst {dimension_numbers = #tpu.dot_dimension_numbers<[1], [0], [0], [1], [0, 0, 1, 1], [], []>} : vector<16x4xf32>, vector<4x128xf32>, vector<16x128xf32> -> vector<16x128xf32>
    %3 = vector.extract_strided_slice %2 {offsets = [0, 0], sizes = [2, 128], strides = [1, 1]} : vector<16x128xf32> to vector<2x128xf32>
    %4 = vector.extract_strided_slice %2 {offsets = [2, 0], sizes = [2, 128], strides = [1, 1]} : vector<16x128xf32> to vector<2x128xf32>
    %5 = vector.extract_strided_slice %2 {offsets = [4, 0], sizes = [2, 128], strides = [1, 1]} : vector<16x128xf32> to vector<2x128xf32>
    %6 = vector.extract_strided_slice %2 {offsets = [6, 0], sizes = [2, 128], strides = [1, 1]} : vector<16x128xf32> to vector<2x128xf32>
    %7 = vector.extract_strided_slice %2 {offsets = [8, 0], sizes = [2, 128], strides = [1, 1]} : vector<16x128xf32> to vector<2x128xf32>
    %8 = vector.extract_strided_slice %2 {offsets = [10, 0], sizes = [2, 128], strides = [1, 1]} : vector<16x128xf32> to vector<2x128xf32>
    %9 = vector.extract_strided_slice %2 {offsets = [12, 0], sizes = [2, 128], strides = [1, 1]} : vector<16x128xf32> to vector<2x128xf32>
    %10 = vector.extract_strided_slice %2 {offsets = [14, 0], sizes = [2, 128], strides = [1, 1]} : vector<16x128xf32> to vector<2x128xf32>
    %c0_3 = arith.constant 0 : index
    %c0_4 = arith.constant 0 : index
    %11 = vector.load %arg4[%c0_3, %c0_4] : memref<32x128xf32, #tpu.memory_space<vmem>>, vector<32x128xf32>
    %c0_5 = arith.constant 0 : index
    %c0_6 = arith.constant 0 : index
    %c0_7 = arith.constant 0 : index
    %12 = vector.load %arg1[%c0_5, %c0_6, %c0_7] : memref<2x2x32xf32, #tpu.memory_space<vmem>>, vector<1x2x32xf32>
    %13 = vector.shape_cast %12 : vector<1x2x32xf32> to vector<2x32xf32>
    %c0_8 = arith.constant 0 : index
    %c0_9 = arith.constant 0 : index
    %c0_10 = arith.constant 0 : index
    %14 = vector.load %arg2[%c0_8, %c0_9, %c0_10] : memref<2x2x32xf32, #tpu.memory_space<vmem>>, vector<1x2x32xf32>
    %15 = vector.shape_cast %14 : vector<1x2x32xf32> to vector<2x32xf32>
    %cst_11 = arith.constant dense<0.000000e+00> : vector<2x128xf32>
    %16 = tpu.matmul %13, %11, %cst_11 {dimension_numbers = #tpu.dot_dimension_numbers<[1], [0], [0], [1], [0, 0, 1, 1], [], []>} : vector<2x32xf32>, vector<32x128xf32>, vector<2x128xf32> -> vector<2x128xf32>
    %17 = arith.addf %3, %16 : vector<2x128xf32>
    %18 = vector.extract_strided_slice %17 {offsets = [0, 0], sizes = [2, 96], strides = [1, 1]} : vector<2x128xf32> to vector<2x96xf32>
    %19 = arith.negf %18 : vector<2x96xf32>
    %20 = math.exp %19 : vector<2x96xf32>
    %cst_12 = arith.constant 1.000000e+00 : f32
    %21 = vector.broadcast %cst_12 : f32 to vector<2x96xf32>
    %22 = arith.addf %21, %20 : vector<2x96xf32>
    %23 = arith.divf %21, %22 : vector<2x96xf32>
    %24 = vector.extract_strided_slice %17 {offsets = [0, 96], sizes = [2, 32], strides = [1, 1]} : vector<2x128xf32> to vector<2x32xf32>
    %25 = math.tanh %24 : vector<2x32xf32>
    %26 = vector.extract_strided_slice %23 {offsets = [0, 0], sizes = [2, 32], strides = [1, 1]} : vector<2x96xf32> to vector<2x32xf32>
    %27 = vector.extract_strided_slice %23 {offsets = [0, 32], sizes = [2, 32], strides = [1, 1]} : vector<2x96xf32> to vector<2x32xf32>
    %28 = vector.extract_strided_slice %23 {offsets = [0, 64], sizes = [2, 32], strides = [1, 1]} : vector<2x96xf32> to vector<2x32xf32>
    %29 = arith.mulf %27, %15 : vector<2x32xf32>
    %30 = arith.mulf %26, %25 : vector<2x32xf32>
    %31 = arith.addf %29, %30 : vector<2x32xf32>
    %32 = math.tanh %31 : vector<2x32xf32>
    %33 = arith.mulf %28, %32 : vector<2x32xf32>
    %cst_13 = arith.constant dense<0.000000e+00> : vector<2x128xf32>
    %34 = tpu.matmul %33, %11, %cst_13 {dimension_numbers = #tpu.dot_dimension_numbers<[1], [0], [0], [1], [0, 0, 1, 1], [], []>} : vector<2x32xf32>, vector<32x128xf32>, vector<2x128xf32> -> vector<2x128xf32>
    %35 = arith.addf %4, %34 : vector<2x128xf32>
    %36 = vector.extract_strided_slice %35 {offsets = [0, 0], sizes = [2, 96], strides = [1, 1]} : vector<2x128xf32> to vector<2x96xf32>
    %37 = arith.negf %36 : vector<2x96xf32>
    %38 = math.exp %37 : vector<2x96xf32>
    %cst_14 = arith.constant 1.000000e+00 : f32
    %39 = vector.broadcast %cst_14 : f32 to vector<2x96xf32>
    %40 = arith.addf %39, %38 : vector<2x96xf32>
    %41 = arith.divf %39, %40 : vector<2x96xf32>
    %42 = vector.extract_strided_slice %35 {offsets = [0, 96], sizes = [2, 32], strides = [1, 1]} : vector<2x128xf32> to vector<2x32xf32>
    %43 = math.tanh %42 : vector<2x32xf32>
    %44 = vector.extract_strided_slice %41 {offsets = [0, 0], sizes = [2, 32], strides = [1, 1]} : vector<2x96xf32> to vector<2x32xf32>
    %45 = vector.extract_strided_slice %41 {offsets = [0, 32], sizes = [2, 32], strides = [1, 1]} : vector<2x96xf32> to vector<2x32xf32>
    %46 = vector.extract_strided_slice %41 {offsets = [0, 64], sizes = [2, 32], strides = [1, 1]} : vector<2x96xf32> to vector<2x32xf32>
    %47 = arith.mulf %45, %31 : vector<2x32xf32>
    %48 = arith.mulf %44, %43 : vector<2x32xf32>
    %49 = arith.addf %47, %48 : vector<2x32xf32>
    %50 = math.tanh %49 : vector<2x32xf32>
    %51 = arith.mulf %46, %50 : vector<2x32xf32>
    %cst_15 = arith.constant dense<0.000000e+00> : vector<2x128xf32>
    %52 = tpu.matmul %51, %11, %cst_15 {dimension_numbers = #tpu.dot_dimension_numbers<[1], [0], [0], [1], [0, 0, 1, 1], [], []>} : vector<2x32xf32>, vector<32x128xf32>, vector<2x128xf32> -> vector<2x128xf32>
    %53 = arith.addf %5, %52 : vector<2x128xf32>
    %54 = vector.extract_strided_slice %53 {offsets = [0, 0], sizes = [2, 96], strides = [1, 1]} : vector<2x128xf32> to vector<2x96xf32>
    %55 = arith.negf %54 : vector<2x96xf32>
    %56 = math.exp %55 : vector<2x96xf32>
    %cst_16 = arith.constant 1.000000e+00 : f32
    %57 = vector.broadcast %cst_16 : f32 to vector<2x96xf32>
    %58 = arith.addf %57, %56 : vector<2x96xf32>
    %59 = arith.divf %57, %58 : vector<2x96xf32>
    %60 = vector.extract_strided_slice %53 {offsets = [0, 96], sizes = [2, 32], strides = [1, 1]} : vector<2x128xf32> to vector<2x32xf32>
    %61 = math.tanh %60 : vector<2x32xf32>
    %62 = vector.extract_strided_slice %59 {offsets = [0, 0], sizes = [2, 32], strides = [1, 1]} : vector<2x96xf32> to vector<2x32xf32>
    %63 = vector.extract_strided_slice %59 {offsets = [0, 32], sizes = [2, 32], strides = [1, 1]} : vector<2x96xf32> to vector<2x32xf32>
    %64 = vector.extract_strided_slice %59 {offsets = [0, 64], sizes = [2, 32], strides = [1, 1]} : vector<2x96xf32> to vector<2x32xf32>
    %65 = arith.mulf %63, %49 : vector<2x32xf32>
    %66 = arith.mulf %62, %61 : vector<2x32xf32>
    %67 = arith.addf %65, %66 : vector<2x32xf32>
    %68 = math.tanh %67 : vector<2x32xf32>
    %69 = arith.mulf %64, %68 : vector<2x32xf32>
    %cst_17 = arith.constant dense<0.000000e+00> : vector<2x128xf32>
    %70 = tpu.matmul %69, %11, %cst_17 {dimension_numbers = #tpu.dot_dimension_numbers<[1], [0], [0], [1], [0, 0, 1, 1], [], []>} : vector<2x32xf32>, vector<32x128xf32>, vector<2x128xf32> -> vector<2x128xf32>
    %71 = arith.addf %6, %70 : vector<2x128xf32>
    %72 = vector.extract_strided_slice %71 {offsets = [0, 0], sizes = [2, 96], strides = [1, 1]} : vector<2x128xf32> to vector<2x96xf32>
    %73 = arith.negf %72 : vector<2x96xf32>
    %74 = math.exp %73 : vector<2x96xf32>
    %cst_18 = arith.constant 1.000000e+00 : f32
    %75 = vector.broadcast %cst_18 : f32 to vector<2x96xf32>
    %76 = arith.addf %75, %74 : vector<2x96xf32>
    %77 = arith.divf %75, %76 : vector<2x96xf32>
    %78 = vector.extract_strided_slice %71 {offsets = [0, 96], sizes = [2, 32], strides = [1, 1]} : vector<2x128xf32> to vector<2x32xf32>
    %79 = math.tanh %78 : vector<2x32xf32>
    %80 = vector.extract_strided_slice %77 {offsets = [0, 0], sizes = [2, 32], strides = [1, 1]} : vector<2x96xf32> to vector<2x32xf32>
    %81 = vector.extract_strided_slice %77 {offsets = [0, 32], sizes = [2, 32], strides = [1, 1]} : vector<2x96xf32> to vector<2x32xf32>
    %82 = vector.extract_strided_slice %77 {offsets = [0, 64], sizes = [2, 32], strides = [1, 1]} : vector<2x96xf32> to vector<2x32xf32>
    %83 = arith.mulf %81, %67 : vector<2x32xf32>
    %84 = arith.mulf %80, %79 : vector<2x32xf32>
    %85 = arith.addf %83, %84 : vector<2x32xf32>
    %86 = math.tanh %85 : vector<2x32xf32>
    %87 = arith.mulf %82, %86 : vector<2x32xf32>
    %cst_19 = arith.constant dense<0.000000e+00> : vector<2x128xf32>
    %88 = tpu.matmul %87, %11, %cst_19 {dimension_numbers = #tpu.dot_dimension_numbers<[1], [0], [0], [1], [0, 0, 1, 1], [], []>} : vector<2x32xf32>, vector<32x128xf32>, vector<2x128xf32> -> vector<2x128xf32>
    %89 = arith.addf %7, %88 : vector<2x128xf32>
    %90 = vector.extract_strided_slice %89 {offsets = [0, 0], sizes = [2, 96], strides = [1, 1]} : vector<2x128xf32> to vector<2x96xf32>
    %91 = arith.negf %90 : vector<2x96xf32>
    %92 = math.exp %91 : vector<2x96xf32>
    %cst_20 = arith.constant 1.000000e+00 : f32
    %93 = vector.broadcast %cst_20 : f32 to vector<2x96xf32>
    %94 = arith.addf %93, %92 : vector<2x96xf32>
    %95 = arith.divf %93, %94 : vector<2x96xf32>
    %96 = vector.extract_strided_slice %89 {offsets = [0, 96], sizes = [2, 32], strides = [1, 1]} : vector<2x128xf32> to vector<2x32xf32>
    %97 = math.tanh %96 : vector<2x32xf32>
    %98 = vector.extract_strided_slice %95 {offsets = [0, 0], sizes = [2, 32], strides = [1, 1]} : vector<2x96xf32> to vector<2x32xf32>
    %99 = vector.extract_strided_slice %95 {offsets = [0, 32], sizes = [2, 32], strides = [1, 1]} : vector<2x96xf32> to vector<2x32xf32>
    %100 = vector.extract_strided_slice %95 {offsets = [0, 64], sizes = [2, 32], strides = [1, 1]} : vector<2x96xf32> to vector<2x32xf32>
    %101 = arith.mulf %99, %85 : vector<2x32xf32>
    %102 = arith.mulf %98, %97 : vector<2x32xf32>
    %103 = arith.addf %101, %102 : vector<2x32xf32>
    %104 = math.tanh %103 : vector<2x32xf32>
    %105 = arith.mulf %100, %104 : vector<2x32xf32>
    %cst_21 = arith.constant dense<0.000000e+00> : vector<2x128xf32>
    %106 = tpu.matmul %105, %11, %cst_21 {dimension_numbers = #tpu.dot_dimension_numbers<[1], [0], [0], [1], [0, 0, 1, 1], [], []>} : vector<2x32xf32>, vector<32x128xf32>, vector<2x128xf32> -> vector<2x128xf32>
    %107 = arith.addf %8, %106 : vector<2x128xf32>
    %108 = vector.extract_strided_slice %107 {offsets = [0, 0], sizes = [2, 96], strides = [1, 1]} : vector<2x128xf32> to vector<2x96xf32>
    %109 = arith.negf %108 : vector<2x96xf32>
    %110 = math.exp %109 : vector<2x96xf32>
    %cst_22 = arith.constant 1.000000e+00 : f32
    %111 = vector.broadcast %cst_22 : f32 to vector<2x96xf32>
    %112 = arith.addf %111, %110 : vector<2x96xf32>
    %113 = arith.divf %111, %112 : vector<2x96xf32>
    %114 = vector.extract_strided_slice %107 {offsets = [0, 96], sizes = [2, 32], strides = [1, 1]} : vector<2x128xf32> to vector<2x32xf32>
    %115 = math.tanh %114 : vector<2x32xf32>
    %116 = vector.extract_strided_slice %113 {offsets = [0, 0], sizes = [2, 32], strides = [1, 1]} : vector<2x96xf32> to vector<2x32xf32>
    %117 = vector.extract_strided_slice %113 {offsets = [0, 32], sizes = [2, 32], strides = [1, 1]} : vector<2x96xf32> to vector<2x32xf32>
    %118 = vector.extract_strided_slice %113 {offsets = [0, 64], sizes = [2, 32], strides = [1, 1]} : vector<2x96xf32> to vector<2x32xf32>
    %119 = arith.mulf %117, %103 : vector<2x32xf32>
    %120 = arith.mulf %116, %115 : vector<2x32xf32>
    %121 = arith.addf %119, %120 : vector<2x32xf32>
    %122 = math.tanh %121 : vector<2x32xf32>
    %123 = arith.mulf %118, %122 : vector<2x32xf32>
    %cst_23 = arith.constant dense<0.000000e+00> : vector<2x128xf32>
    %124 = tpu.matmul %123, %11, %cst_23 {dimension_numbers = #tpu.dot_dimension_numbers<[1], [0], [0], [1], [0, 0, 1, 1], [], []>} : vector<2x32xf32>, vector<32x128xf32>, vector<2x128xf32> -> vector<2x128xf32>
    %125 = arith.addf %9, %124 : vector<2x128xf32>
    %126 = vector.extract_strided_slice %125 {offsets = [0, 0], sizes = [2, 96], strides = [1, 1]} : vector<2x128xf32> to vector<2x96xf32>
    %127 = arith.negf %126 : vector<2x96xf32>
    %128 = math.exp %127 : vector<2x96xf32>
    %cst_24 = arith.constant 1.000000e+00 : f32
    %129 = vector.broadcast %cst_24 : f32 to vector<2x96xf32>
    %130 = arith.addf %129, %128 : vector<2x96xf32>
    %131 = arith.divf %129, %130 : vector<2x96xf32>
    %132 = vector.extract_strided_slice %125 {offsets = [0, 96], sizes = [2, 32], strides = [1, 1]} : vector<2x128xf32> to vector<2x32xf32>
    %133 = math.tanh %132 : vector<2x32xf32>
    %134 = vector.extract_strided_slice %131 {offsets = [0, 0], sizes = [2, 32], strides = [1, 1]} : vector<2x96xf32> to vector<2x32xf32>
    %135 = vector.extract_strided_slice %131 {offsets = [0, 32], sizes = [2, 32], strides = [1, 1]} : vector<2x96xf32> to vector<2x32xf32>
    %136 = vector.extract_strided_slice %131 {offsets = [0, 64], sizes = [2, 32], strides = [1, 1]} : vector<2x96xf32> to vector<2x32xf32>
    %137 = arith.mulf %135, %121 : vector<2x32xf32>
    %138 = arith.mulf %134, %133 : vector<2x32xf32>
    %139 = arith.addf %137, %138 : vector<2x32xf32>
    %140 = math.tanh %139 : vector<2x32xf32>
    %141 = arith.mulf %136, %140 : vector<2x32xf32>
    %cst_25 = arith.constant dense<0.000000e+00> : vector<2x128xf32>
    %142 = tpu.matmul %141, %11, %cst_25 {dimension_numbers = #tpu.dot_dimension_numbers<[1], [0], [0], [1], [0, 0, 1, 1], [], []>} : vector<2x32xf32>, vector<32x128xf32>, vector<2x128xf32> -> vector<2x128xf32>
    %143 = arith.addf %10, %142 : vector<2x128xf32>
    %144 = vector.extract_strided_slice %143 {offsets = [0, 0], sizes = [2, 96], strides = [1, 1]} : vector<2x128xf32> to vector<2x96xf32>
    %145 = arith.negf %144 : vector<2x96xf32>
    %146 = math.exp %145 : vector<2x96xf32>
    %cst_26 = arith.constant 1.000000e+00 : f32
    %147 = vector.broadcast %cst_26 : f32 to vector<2x96xf32>
    %148 = arith.addf %147, %146 : vector<2x96xf32>
    %149 = arith.divf %147, %148 : vector<2x96xf32>
    %150 = vector.extract_strided_slice %143 {offsets = [0, 96], sizes = [2, 32], strides = [1, 1]} : vector<2x128xf32> to vector<2x32xf32>
    %151 = math.tanh %150 : vector<2x32xf32>
    %152 = vector.extract_strided_slice %149 {offsets = [0, 0], sizes = [2, 32], strides = [1, 1]} : vector<2x96xf32> to vector<2x32xf32>
    %153 = vector.extract_strided_slice %149 {offsets = [0, 32], sizes = [2, 32], strides = [1, 1]} : vector<2x96xf32> to vector<2x32xf32>
    %154 = vector.extract_strided_slice %149 {offsets = [0, 64], sizes = [2, 32], strides = [1, 1]} : vector<2x96xf32> to vector<2x32xf32>
    %155 = arith.mulf %153, %139 : vector<2x32xf32>
    %156 = arith.mulf %152, %151 : vector<2x32xf32>
    %157 = arith.addf %155, %156 : vector<2x32xf32>
    %158 = math.tanh %157 : vector<2x32xf32>
    %159 = arith.mulf %154, %158 : vector<2x32xf32>
    %c0_27 = arith.constant 0 : index
    %c0_28 = arith.constant 0 : index
    %c0_29 = arith.constant 0 : index
    %160 = vector.load %arg14[%c0_27, %c0_28, %c0_29] : memref<2x2x32xf32, #tpu.memory_space<vmem>>, vector<1x2x32xf32>
    %161 = vector.shape_cast %160 : vector<1x2x32xf32> to vector<2x32xf32>
    %162 = vector.shape_cast %159 : vector<2x32xf32> to vector<1x2x32xf32>
    tpu.vector_store %arg14[%c0_27, %c0_28, %c0_29], %162 {strides = array<i32>} : memref<2x2x32xf32, #tpu.memory_space<vmem>>, vector<1x2x32xf32>,
    %c0_30 = arith.constant 0 : index
    %c0_31 = arith.constant 0 : index
    %c0_32 = arith.constant 0 : index
    %163 = vector.load %arg15[%c0_30, %c0_31, %c0_32] : memref<2x2x32xf32, #tpu.memory_space<vmem>>, vector<1x2x32xf32>
    %164 = vector.shape_cast %163 : vector<1x2x32xf32> to vector<2x32xf32>
    %165 = vector.shape_cast %157 : vector<2x32xf32> to vector<1x2x32xf32>
    tpu.vector_store %arg15[%c0_30, %c0_31, %c0_32], %165 {strides = array<i32>} : memref<2x2x32xf32, #tpu.memory_space<vmem>>, vector<1x2x32xf32>,
    %c0_33 = arith.constant 0 : index
    %c0_34 = arith.constant 0 : index
    %166 = vector.load %arg6[%c0_33, %c0_34] : memref<32x128xf32, #tpu.memory_space<vmem>>, vector<32x128xf32>
    %c0_35 = arith.constant 0 : index
    %c0_36 = arith.constant 0 : index
    %167 = vector.load %arg5[%c0_35, %c0_36] : memref<32x128xf32, #tpu.memory_space<vmem>>, vector<32x128xf32>
    %cst_37 = arith.constant dense<0.000000e+00> : vector<2x128xf32>
    %168 = tpu.matmul %33, %167, %cst_37 {dimension_numbers = #tpu.dot_dimension_numbers<[1], [0], [0], [1], [0, 0, 1, 1], [], []>} : vector<2x32xf32>, vector<32x128xf32>, vector<2x128xf32> -> vector<2x128xf32>
    %cst_38 = arith.constant dense<0.000000e+00> : vector<2x128xf32>
    %169 = tpu.matmul %51, %167, %cst_38 {dimension_numbers = #tpu.dot_dimension_numbers<[1], [0], [0], [1], [0, 0, 1, 1], [], []>} : vector<2x32xf32>, vector<32x128xf32>, vector<2x128xf32> -> vector<2x128xf32>
    %cst_39 = arith.constant dense<0.000000e+00> : vector<2x128xf32>
    %170 = tpu.matmul %69, %167, %cst_39 {dimension_numbers = #tpu.dot_dimension_numbers<[1], [0], [0], [1], [0, 0, 1, 1], [], []>} : vector<2x32xf32>, vector<32x128xf32>, vector<2x128xf32> -> vector<2x128xf32>
    %cst_40 = arith.constant dense<0.000000e+00> : vector<2x128xf32>
    %171 = tpu.matmul %87, %167, %cst_40 {dimension_numbers = #tpu.dot_dimension_numbers<[1], [0], [0], [1], [0, 0, 1, 1], [], []>} : vector<2x32xf32>, vector<32x128xf32>, vector<2x128xf32> -> vector<2x128xf32>
    %cst_41 = arith.constant dense<0.000000e+00> : vector<2x128xf32>
    %172 = tpu.matmul %105, %167, %cst_41 {dimension_numbers = #tpu.dot_dimension_numbers<[1], [0], [0], [1], [0, 0, 1, 1], [], []>} : vector<2x32xf32>, vector<32x128xf32>, vector<2x128xf32> -> vector<2x128xf32>
    %cst_42 = arith.constant dense<0.000000e+00> : vector<2x128xf32>
    %173 = tpu.matmul %123, %167, %cst_42 {dimension_numbers = #tpu.dot_dimension_numbers<[1], [0], [0], [1], [0, 0, 1, 1], [], []>} : vector<2x32xf32>, vector<32x128xf32>, vector<2x128xf32> -> vector<2x128xf32>
    %cst_43 = arith.constant dense<0.000000e+00> : vector<2x128xf32>
    %174 = tpu.matmul %141, %167, %cst_43 {dimension_numbers = #tpu.dot_dimension_numbers<[1], [0], [0], [1], [0, 0, 1, 1], [], []>} : vector<2x32xf32>, vector<32x128xf32>, vector<2x128xf32> -> vector<2x128xf32>
    %cst_44 = arith.constant dense<0.000000e+00> : vector<2x128xf32>
    %175 = tpu.matmul %159, %167, %cst_44 {dimension_numbers = #tpu.dot_dimension_numbers<[1], [0], [0], [1], [0, 0, 1, 1], [], []>} : vector<2x32xf32>, vector<32x128xf32>, vector<2x128xf32> -> vector<2x128xf32>
    %c1 = arith.constant 1 : index
    %c0_45 = arith.constant 0 : index
    %c0_46 = arith.constant 0 : index
    %176 = vector.load %arg1[%c1, %c0_45, %c0_46] : memref<2x2x32xf32, #tpu.memory_space<vmem>>, vector<1x2x32xf32>
    %177 = vector.shape_cast %176 : vector<1x2x32xf32> to vector<2x32xf32>
    %c1_47 = arith.constant 1 : index
    %c0_48 = arith.constant 0 : index
    %c0_49 = arith.constant 0 : index
    %178 = vector.load %arg2[%c1_47, %c0_48, %c0_49] : memref<2x2x32xf32, #tpu.memory_space<vmem>>, vector<1x2x32xf32>
    %179 = vector.shape_cast %178 : vector<1x2x32xf32> to vector<2x32xf32>
    %cst_50 = arith.constant dense<0.000000e+00> : vector<2x128xf32>
    %180 = tpu.matmul %177, %166, %cst_50 {dimension_numbers = #tpu.dot_dimension_numbers<[1], [0], [0], [1], [0, 0, 1, 1], [], []>} : vector<2x32xf32>, vector<32x128xf32>, vector<2x128xf32> -> vector<2x128xf32>
    %181 = arith.addf %168, %180 : vector<2x128xf32>
    %182 = vector.extract_strided_slice %181 {offsets = [0, 0], sizes = [2, 96], strides = [1, 1]} : vector<2x128xf32> to vector<2x96xf32>
    %183 = arith.negf %182 : vector<2x96xf32>
    %184 = math.exp %183 : vector<2x96xf32>
    %cst_51 = arith.constant 1.000000e+00 : f32
    %185 = vector.broadcast %cst_51 : f32 to vector<2x96xf32>
    %186 = arith.addf %185, %184 : vector<2x96xf32>
    %187 = arith.divf %185, %186 : vector<2x96xf32>
    %188 = vector.extract_strided_slice %181 {offsets = [0, 96], sizes = [2, 32], strides = [1, 1]} : vector<2x128xf32> to vector<2x32xf32>
    %189 = math.tanh %188 : vector<2x32xf32>
    %190 = vector.extract_strided_slice %187 {offsets = [0, 0], sizes = [2, 32], strides = [1, 1]} : vector<2x96xf32> to vector<2x32xf32>
    %191 = vector.extract_strided_slice %187 {offsets = [0, 32], sizes = [2, 32], strides = [1, 1]} : vector<2x96xf32> to vector<2x32xf32>
    %192 = vector.extract_strided_slice %187 {offsets = [0, 64], sizes = [2, 32], strides = [1, 1]} : vector<2x96xf32> to vector<2x32xf32>
    %193 = arith.mulf %191, %179 : vector<2x32xf32>
    %194 = arith.mulf %190, %189 : vector<2x32xf32>
    %195 = arith.addf %193, %194 : vector<2x32xf32>
    %196 = math.tanh %195 : vector<2x32xf32>
    %197 = arith.mulf %192, %196 : vector<2x32xf32>
    %cst_52 = arith.constant dense<0.000000e+00> : vector<2x128xf32>
    %198 = tpu.matmul %197, %166, %cst_52 {dimension_numbers = #tpu.dot_dimension_numbers<[1], [0], [0], [1], [0, 0, 1, 1], [], []>} : vector<2x32xf32>, vector<32x128xf32>, vector<2x128xf32> -> vector<2x128xf32>
    %199 = arith.addf %169, %198 : vector<2x128xf32>
    %200 = vector.extract_strided_slice %199 {offsets = [0, 0], sizes = [2, 96], strides = [1, 1]} : vector<2x128xf32> to vector<2x96xf32>
    %201 = arith.negf %200 : vector<2x96xf32>
    %202 = math.exp %201 : vector<2x96xf32>
    %cst_53 = arith.constant 1.000000e+00 : f32
    %203 = vector.broadcast %cst_53 : f32 to vector<2x96xf32>
    %204 = arith.addf %203, %202 : vector<2x96xf32>
    %205 = arith.divf %203, %204 : vector<2x96xf32>
    %206 = vector.extract_strided_slice %199 {offsets = [0, 96], sizes = [2, 32], strides = [1, 1]} : vector<2x128xf32> to vector<2x32xf32>
    %207 = math.tanh %206 : vector<2x32xf32>
    %208 = vector.extract_strided_slice %205 {offsets = [0, 0], sizes = [2, 32], strides = [1, 1]} : vector<2x96xf32> to vector<2x32xf32>
    %209 = vector.extract_strided_slice %205 {offsets = [0, 32], sizes = [2, 32], strides = [1, 1]} : vector<2x96xf32> to vector<2x32xf32>
    %210 = vector.extract_strided_slice %205 {offsets = [0, 64], sizes = [2, 32], strides = [1, 1]} : vector<2x96xf32> to vector<2x32xf32>
    %211 = arith.mulf %209, %195 : vector<2x32xf32>
    %212 = arith.mulf %208, %207 : vector<2x32xf32>
    %213 = arith.addf %211, %212 : vector<2x32xf32>
    %214 = math.tanh %213 : vector<2x32xf32>
    %215 = arith.mulf %210, %214 : vector<2x32xf32>
    %cst_54 = arith.constant dense<0.000000e+00> : vector<2x128xf32>
    %216 = tpu.matmul %215, %166, %cst_54 {dimension_numbers = #tpu.dot_dimension_numbers<[1], [0], [0], [1], [0, 0, 1, 1], [], []>} : vector<2x32xf32>, vector<32x128xf32>, vector<2x128xf32> -> vector<2x128xf32>
    %217 = arith.addf %170, %216 : vector<2x128xf32>
    %218 = vector.extract_strided_slice %217 {offsets = [0, 0], sizes = [2, 96], strides = [1, 1]} : vector<2x128xf32> to vector<2x96xf32>
    %219 = arith.negf %218 : vector<2x96xf32>
    %220 = math.exp %219 : vector<2x96xf32>
    %cst_55 = arith.constant 1.000000e+00 : f32
    %221 = vector.broadcast %cst_55 : f32 to vector<2x96xf32>
    %222 = arith.addf %221, %220 : vector<2x96xf32>
    %223 = arith.divf %221, %222 : vector<2x96xf32>
    %224 = vector.extract_strided_slice %217 {offsets = [0, 96], sizes = [2, 32], strides = [1, 1]} : vector<2x128xf32> to vector<2x32xf32>
    %225 = math.tanh %224 : vector<2x32xf32>
    %226 = vector.extract_strided_slice %223 {offsets = [0, 0], sizes = [2, 32], strides = [1, 1]} : vector<2x96xf32> to vector<2x32xf32>
    %227 = vector.extract_strided_slice %223 {offsets = [0, 32], sizes = [2, 32], strides = [1, 1]} : vector<2x96xf32> to vector<2x32xf32>
    %228 = vector.extract_strided_slice %223 {offsets = [0, 64], sizes = [2, 32], strides = [1, 1]} : vector<2x96xf32> to vector<2x32xf32>
    %229 = arith.mulf %227, %213 : vector<2x32xf32>
    %230 = arith.mulf %226, %225 : vector<2x32xf32>
    %231 = arith.addf %229, %230 : vector<2x32xf32>
    %232 = math.tanh %231 : vector<2x32xf32>
    %233 = arith.mulf %228, %232 : vector<2x32xf32>
    %cst_56 = arith.constant dense<0.000000e+00> : vector<2x128xf32>
    %234 = tpu.matmul %233, %166, %cst_56 {dimension_numbers = #tpu.dot_dimension_numbers<[1], [0], [0], [1], [0, 0, 1, 1], [], []>} : vector<2x32xf32>, vector<32x128xf32>, vector<2x128xf32> -> vector<2x128xf32>
    %235 = arith.addf %171, %234 : vector<2x128xf32>
    %236 = vector.extract_strided_slice %235 {offsets = [0, 0], sizes = [2, 96], strides = [1, 1]} : vector<2x128xf32> to vector<2x96xf32>
    %237 = arith.negf %236 : vector<2x96xf32>
    %238 = math.exp %237 : vector<2x96xf32>
    %cst_57 = arith.constant 1.000000e+00 : f32
    %239 = vector.broadcast %cst_57 : f32 to vector<2x96xf32>
    %240 = arith.addf %239, %238 : vector<2x96xf32>
    %241 = arith.divf %239, %240 : vector<2x96xf32>
    %242 = vector.extract_strided_slice %235 {offsets = [0, 96], sizes = [2, 32], strides = [1, 1]} : vector<2x128xf32> to vector<2x32xf32>
    %243 = math.tanh %242 : vector<2x32xf32>
    %244 = vector.extract_strided_slice %241 {offsets = [0, 0], sizes = [2, 32], strides = [1, 1]} : vector<2x96xf32> to vector<2x32xf32>
    %245 = vector.extract_strided_slice %241 {offsets = [0, 32], sizes = [2, 32], strides = [1, 1]} : vector<2x96xf32> to vector<2x32xf32>
    %246 = vector.extract_strided_slice %241 {offsets = [0, 64], sizes = [2, 32], strides = [1, 1]} : vector<2x96xf32> to vector<2x32xf32>
    %247 = arith.mulf %245, %231 : vector<2x32xf32>
    %248 = arith.mulf %244, %243 : vector<2x32xf32>
    %249 = arith.addf %247, %248 : vector<2x32xf32>
    %250 = math.tanh %249 : vector<2x32xf32>
    %251 = arith.mulf %246, %250 : vector<2x32xf32>
    %cst_58 = arith.constant dense<0.000000e+00> : vector<2x128xf32>
    %252 = tpu.matmul %251, %166, %cst_58 {dimension_numbers = #tpu.dot_dimension_numbers<[1], [0], [0], [1], [0, 0, 1, 1], [], []>} : vector<2x32xf32>, vector<32x128xf32>, vector<2x128xf32> -> vector<2x128xf32>
    %253 = arith.addf %172, %252 : vector<2x128xf32>
    %254 = vector.extract_strided_slice %253 {offsets = [0, 0], sizes = [2, 96], strides = [1, 1]} : vector<2x128xf32> to vector<2x96xf32>
    %255 = arith.negf %254 : vector<2x96xf32>
    %256 = math.exp %255 : vector<2x96xf32>
    %cst_59 = arith.constant 1.000000e+00 : f32
    %257 = vector.broadcast %cst_59 : f32 to vector<2x96xf32>
    %258 = arith.addf %257, %256 : vector<2x96xf32>
    %259 = arith.divf %257, %258 : vector<2x96xf32>
    %260 = vector.extract_strided_slice %253 {offsets = [0, 96], sizes = [2, 32], strides = [1, 1]} : vector<2x128xf32> to vector<2x32xf32>
    %261 = math.tanh %260 : vector<2x32xf32>
    %262 = vector.extract_strided_slice %259 {offsets = [0, 0], sizes = [2, 32], strides = [1, 1]} : vector<2x96xf32> to vector<2x32xf32>
    %263 = vector.extract_strided_slice %259 {offsets = [0, 32], sizes = [2, 32], strides = [1, 1]} : vector<2x96xf32> to vector<2x32xf32>
    %264 = vector.extract_strided_slice %259 {offsets = [0, 64], sizes = [2, 32], strides = [1, 1]} : vector<2x96xf32> to vector<2x32xf32>
    %265 = arith.mulf %263, %249 : vector<2x32xf32>
    %266 = arith.mulf %262, %261 : vector<2x32xf32>
    %267 = arith.addf %265, %266 : vector<2x32xf32>
    %268 = math.tanh %267 : vector<2x32xf32>
    %269 = arith.mulf %264, %268 : vector<2x32xf32>
    %cst_60 = arith.constant dense<0.000000e+00> : vector<2x128xf32>
    %270 = tpu.matmul %269, %166, %cst_60 {dimension_numbers = #tpu.dot_dimension_numbers<[1], [0], [0], [1], [0, 0, 1, 1], [], []>} : vector<2x32xf32>, vector<32x128xf32>, vector<2x128xf32> -> vector<2x128xf32>
    %271 = arith.addf %173, %270 : vector<2x128xf32>
    %272 = vector.extract_strided_slice %271 {offsets = [0, 0], sizes = [2, 96], strides = [1, 1]} : vector<2x128xf32> to vector<2x96xf32>
    %273 = arith.negf %272 : vector<2x96xf32>
    %274 = math.exp %273 : vector<2x96xf32>
    %cst_61 = arith.constant 1.000000e+00 : f32
    %275 = vector.broadcast %cst_61 : f32 to vector<2x96xf32>
    %276 = arith.addf %275, %274 : vector<2x96xf32>
    %277 = arith.divf %275, %276 : vector<2x96xf32>
    %278 = vector.extract_strided_slice %271 {offsets = [0, 96], sizes = [2, 32], strides = [1, 1]} : vector<2x128xf32> to vector<2x32xf32>
    %279 = math.tanh %278 : vector<2x32xf32>
    %280 = vector.extract_strided_slice %277 {offsets = [0, 0], sizes = [2, 32], strides = [1, 1]} : vector<2x96xf32> to vector<2x32xf32>
    %281 = vector.extract_strided_slice %277 {offsets = [0, 32], sizes = [2, 32], strides = [1, 1]} : vector<2x96xf32> to vector<2x32xf32>
    %282 = vector.extract_strided_slice %277 {offsets = [0, 64], sizes = [2, 32], strides = [1, 1]} : vector<2x96xf32> to vector<2x32xf32>
    %283 = arith.mulf %281, %267 : vector<2x32xf32>
    %284 = arith.mulf %280, %279 : vector<2x32xf32>
    %285 = arith.addf %283, %284 : vector<2x32xf32>
    %286 = math.tanh %285 : vector<2x32xf32>
    %287 = arith.mulf %282, %286 : vector<2x32xf32>
    %cst_62 = arith.constant dense<0.000000e+00> : vector<2x128xf32>
    %288 = tpu.matmul %287, %166, %cst_62 {dimension_numbers = #tpu.dot_dimension_numbers<[1], [0], [0], [1], [0, 0, 1, 1], [], []>} : vector<2x32xf32>, vector<32x128xf32>, vector<2x128xf32> -> vector<2x128xf32>
    %289 = arith.addf %174, %288 : vector<2x128xf32>
    %290 = vector.extract_strided_slice %289 {offsets = [0, 0], sizes = [2, 96], strides = [1, 1]} : vector<2x128xf32> to vector<2x96xf32>
    %291 = arith.negf %290 : vector<2x96xf32>
    %292 = math.exp %291 : vector<2x96xf32>
    %cst_63 = arith.constant 1.000000e+00 : f32
    %293 = vector.broadcast %cst_63 : f32 to vector<2x96xf32>
    %294 = arith.addf %293, %292 : vector<2x96xf32>
    %295 = arith.divf %293, %294 : vector<2x96xf32>
    %296 = vector.extract_strided_slice %289 {offsets = [0, 96], sizes = [2, 32], strides = [1, 1]} : vector<2x128xf32> to vector<2x32xf32>
    %297 = math.tanh %296 : vector<2x32xf32>
    %298 = vector.extract_strided_slice %295 {offsets = [0, 0], sizes = [2, 32], strides = [1, 1]} : vector<2x96xf32> to vector<2x32xf32>
    %299 = vector.extract_strided_slice %295 {offsets = [0, 32], sizes = [2, 32], strides = [1, 1]} : vector<2x96xf32> to vector<2x32xf32>
    %300 = vector.extract_strided_slice %295 {offsets = [0, 64], sizes = [2, 32], strides = [1, 1]} : vector<2x96xf32> to vector<2x32xf32>
    %301 = arith.mulf %299, %285 : vector<2x32xf32>
    %302 = arith.mulf %298, %297 : vector<2x32xf32>
    %303 = arith.addf %301, %302 : vector<2x32xf32>
    %304 = math.tanh %303 : vector<2x32xf32>
    %305 = arith.mulf %300, %304 : vector<2x32xf32>
    %cst_64 = arith.constant dense<0.000000e+00> : vector<2x128xf32>
    %306 = tpu.matmul %305, %166, %cst_64 {dimension_numbers = #tpu.dot_dimension_numbers<[1], [0], [0], [1], [0, 0, 1, 1], [], []>} : vector<2x32xf32>, vector<32x128xf32>, vector<2x128xf32> -> vector<2x128xf32>
    %307 = arith.addf %175, %306 : vector<2x128xf32>
    %308 = vector.extract_strided_slice %307 {offsets = [0, 0], sizes = [2, 96], strides = [1, 1]} : vector<2x128xf32> to vector<2x96xf32>
    %309 = arith.negf %308 : vector<2x96xf32>
    %310 = math.exp %309 : vector<2x96xf32>
    %cst_65 = arith.constant 1.000000e+00 : f32
    %311 = vector.broadcast %cst_65 : f32 to vector<2x96xf32>
    %312 = arith.addf %311, %310 : vector<2x96xf32>
    %313 = arith.divf %311, %312 : vector<2x96xf32>
    %314 = vector.extract_strided_slice %307 {offsets = [0, 96], sizes = [2, 32], strides = [1, 1]} : vector<2x128xf32> to vector<2x32xf32>
    %315 = math.tanh %314 : vector<2x32xf32>
    %316 = vector.extract_strided_slice %313 {offsets = [0, 0], sizes = [2, 32], strides = [1, 1]} : vector<2x96xf32> to vector<2x32xf32>
    %317 = vector.extract_strided_slice %313 {offsets = [0, 32], sizes = [2, 32], strides = [1, 1]} : vector<2x96xf32> to vector<2x32xf32>
    %318 = vector.extract_strided_slice %313 {offsets = [0, 64], sizes = [2, 32], strides = [1, 1]} : vector<2x96xf32> to vector<2x32xf32>
    %319 = arith.mulf %317, %303 : vector<2x32xf32>
    %320 = arith.mulf %316, %315 : vector<2x32xf32>
    %321 = arith.addf %319, %320 : vector<2x32xf32>
    %322 = math.tanh %321 : vector<2x32xf32>
    %323 = arith.mulf %318, %322 : vector<2x32xf32>
    %c1_66 = arith.constant 1 : index
    %c0_67 = arith.constant 0 : index
    %c0_68 = arith.constant 0 : index
    %324 = vector.load %arg14[%c1_66, %c0_67, %c0_68] : memref<2x2x32xf32, #tpu.memory_space<vmem>>, vector<1x2x32xf32>
    %325 = vector.shape_cast %324 : vector<1x2x32xf32> to vector<2x32xf32>
    %326 = vector.shape_cast %323 : vector<2x32xf32> to vector<1x2x32xf32>
    tpu.vector_store %arg14[%c1_66, %c0_67, %c0_68], %326 {strides = array<i32>} : memref<2x2x32xf32, #tpu.memory_space<vmem>>, vector<1x2x32xf32>,
    %c1_69 = arith.constant 1 : index
    %c0_70 = arith.constant 0 : index
    %c0_71 = arith.constant 0 : index
    %327 = vector.load %arg15[%c1_69, %c0_70, %c0_71] : memref<2x2x32xf32, #tpu.memory_space<vmem>>, vector<1x2x32xf32>
    %328 = vector.shape_cast %327 : vector<1x2x32xf32> to vector<2x32xf32>
    %329 = vector.shape_cast %321 : vector<2x32xf32> to vector<1x2x32xf32>
    tpu.vector_store %arg15[%c1_69, %c0_70, %c0_71], %329 {strides = array<i32>} : memref<2x2x32xf32, #tpu.memory_space<vmem>>, vector<1x2x32xf32>,
    %c0_72 = arith.constant 0 : index
    %c0_73 = arith.constant 0 : index
    %330 = vector.load %arg8[%c0_72, %c0_73] : memref<1x32xf32, #tpu.memory_space<vmem>>, vector<1x32xf32>
    %c0_74 = arith.constant 0 : index
    %c0_75 = arith.constant 0 : index
    %c0_76 = arith.constant 0 : index
    %331 = vector.load %arg7[%c0_74, %c0_75, %c0_76] : memref<8x32x32xf32, #tpu.memory_space<vmem>>, vector<1x32x32xf32>
    %332 = vector.shape_cast %331 : vector<1x32x32xf32> to vector<32x32xf32>
    %cst_77 = arith.constant dense<0.000000e+00> : vector<2x32xf32>
    %333 = tpu.matmul %197, %332, %cst_77 {dimension_numbers = #tpu.dot_dimension_numbers<[1], [0], [0], [1], [0, 0, 1, 1], [], []>} : vector<2x32xf32>, vector<32x32xf32>, vector<2x32xf32> -> vector<2x32xf32>
    %334 = vector.broadcast %330 : vector<1x32xf32> to vector<2x32xf32>
    %335 = arith.addf %334, %333 : vector<2x32xf32>
    %c1_78 = arith.constant 1 : index
    %c0_79 = arith.constant 0 : index
    %c0_80 = arith.constant 0 : index
    %336 = vector.load %arg7[%c1_78, %c0_79, %c0_80] : memref<8x32x32xf32, #tpu.memory_space<vmem>>, vector<1x32x32xf32>
    %337 = vector.shape_cast %336 : vector<1x32x32xf32> to vector<32x32xf32>
    %cst_81 = arith.constant dense<0.000000e+00> : vector<2x32xf32>
    %338 = tpu.matmul %215, %337, %cst_81 {dimension_numbers = #tpu.dot_dimension_numbers<[1], [0], [0], [1], [0, 0, 1, 1], [], []>} : vector<2x32xf32>, vector<32x32xf32>, vector<2x32xf32> -> vector<2x32xf32>
    %339 = arith.addf %335, %338 : vector<2x32xf32>
    %c2 = arith.constant 2 : index
    %c0_82 = arith.constant 0 : index
    %c0_83 = arith.constant 0 : index
    %340 = vector.load %arg7[%c2, %c0_82, %c0_83] : memref<8x32x32xf32, #tpu.memory_space<vmem>>, vector<1x32x32xf32>
    %341 = vector.shape_cast %340 : vector<1x32x32xf32> to vector<32x32xf32>
    %cst_84 = arith.constant dense<0.000000e+00> : vector<2x32xf32>
    %342 = tpu.matmul %233, %341, %cst_84 {dimension_numbers = #tpu.dot_dimension_numbers<[1], [0], [0], [1], [0, 0, 1, 1], [], []>} : vector<2x32xf32>, vector<32x32xf32>, vector<2x32xf32> -> vector<2x32xf32>
    %343 = arith.addf %339, %342 : vector<2x32xf32>
    %c3 = arith.constant 3 : index
    %c0_85 = arith.constant 0 : index
    %c0_86 = arith.constant 0 : index
    %344 = vector.load %arg7[%c3, %c0_85, %c0_86] : memref<8x32x32xf32, #tpu.memory_space<vmem>>, vector<1x32x32xf32>
    %345 = vector.shape_cast %344 : vector<1x32x32xf32> to vector<32x32xf32>
    %cst_87 = arith.constant dense<0.000000e+00> : vector<2x32xf32>
    %346 = tpu.matmul %251, %345, %cst_87 {dimension_numbers = #tpu.dot_dimension_numbers<[1], [0], [0], [1], [0, 0, 1, 1], [], []>} : vector<2x32xf32>, vector<32x32xf32>, vector<2x32xf32> -> vector<2x32xf32>
    %347 = arith.addf %343, %346 : vector<2x32xf32>
    %c4 = arith.constant 4 : index
    %c0_88 = arith.constant 0 : index
    %c0_89 = arith.constant 0 : index
    %348 = vector.load %arg7[%c4, %c0_88, %c0_89] : memref<8x32x32xf32, #tpu.memory_space<vmem>>, vector<1x32x32xf32>
    %349 = vector.shape_cast %348 : vector<1x32x32xf32> to vector<32x32xf32>
    %cst_90 = arith.constant dense<0.000000e+00> : vector<2x32xf32>
    %350 = tpu.matmul %269, %349, %cst_90 {dimension_numbers = #tpu.dot_dimension_numbers<[1], [0], [0], [1], [0, 0, 1, 1], [], []>} : vector<2x32xf32>, vector<32x32xf32>, vector<2x32xf32> -> vector<2x32xf32>
    %351 = arith.addf %347, %350 : vector<2x32xf32>
    %c5 = arith.constant 5 : index
    %c0_91 = arith.constant 0 : index
    %c0_92 = arith.constant 0 : index
    %352 = vector.load %arg7[%c5, %c0_91, %c0_92] : memref<8x32x32xf32, #tpu.memory_space<vmem>>, vector<1x32x32xf32>
    %353 = vector.shape_cast %352 : vector<1x32x32xf32> to vector<32x32xf32>
    %cst_93 = arith.constant dense<0.000000e+00> : vector<2x32xf32>
    %354 = tpu.matmul %287, %353, %cst_93 {dimension_numbers = #tpu.dot_dimension_numbers<[1], [0], [0], [1], [0, 0, 1, 1], [], []>} : vector<2x32xf32>, vector<32x32xf32>, vector<2x32xf32> -> vector<2x32xf32>
    %355 = arith.addf %351, %354 : vector<2x32xf32>
    %c6 = arith.constant 6 : index
    %c0_94 = arith.constant 0 : index
    %c0_95 = arith.constant 0 : index
    %356 = vector.load %arg7[%c6, %c0_94, %c0_95] : memref<8x32x32xf32, #tpu.memory_space<vmem>>, vector<1x32x32xf32>
    %357 = vector.shape_cast %356 : vector<1x32x32xf32> to vector<32x32xf32>
    %cst_96 = arith.constant dense<0.000000e+00> : vector<2x32xf32>
    %358 = tpu.matmul %305, %357, %cst_96 {dimension_numbers = #tpu.dot_dimension_numbers<[1], [0], [0], [1], [0, 0, 1, 1], [], []>} : vector<2x32xf32>, vector<32x32xf32>, vector<2x32xf32> -> vector<2x32xf32>
    %359 = arith.addf %355, %358 : vector<2x32xf32>
    %c7 = arith.constant 7 : index
    %c0_97 = arith.constant 0 : index
    %c0_98 = arith.constant 0 : index
    %360 = vector.load %arg7[%c7, %c0_97, %c0_98] : memref<8x32x32xf32, #tpu.memory_space<vmem>>, vector<1x32x32xf32>
    %361 = vector.shape_cast %360 : vector<1x32x32xf32> to vector<32x32xf32>
    %cst_99 = arith.constant dense<0.000000e+00> : vector<2x32xf32>
    %362 = tpu.matmul %323, %361, %cst_99 {dimension_numbers = #tpu.dot_dimension_numbers<[1], [0], [0], [1], [0, 0, 1, 1], [], []>} : vector<2x32xf32>, vector<32x32xf32>, vector<2x32xf32> -> vector<2x32xf32>
    %363 = arith.addf %359, %362 : vector<2x32xf32>
    %c0_100 = arith.constant 0 : index
    %c0_101 = arith.constant 0 : index
    %364 = vector.load %arg9[%c0_100, %c0_101] : memref<32x96xf32, #tpu.memory_space<vmem>>, vector<32x96xf32>
    %c0_102 = arith.constant 0 : index
    %c0_103 = arith.constant 0 : index
    %365 = vector.load %arg10[%c0_102, %c0_103] : memref<1x96xf32, #tpu.memory_space<vmem>>, vector<1x96xf32>
    %c0_104 = arith.constant 0 : index
    %c0_105 = arith.constant 0 : index
    %366 = vector.load %arg11[%c0_104, %c0_105] : memref<32x32xf32, #tpu.memory_space<vmem>>, vector<32x32xf32>
    %c0_106 = arith.constant 0 : index
    %c0_107 = arith.constant 0 : index
    %367 = vector.load %arg12[%c0_106, %c0_107] : memref<1x32xf32, #tpu.memory_space<vmem>>, vector<1x32xf32>
    %cst_108 = arith.constant dense<0.000000e+00> : vector<2x96xf32>
    %368 = tpu.matmul %363, %364, %cst_108 {dimension_numbers = #tpu.dot_dimension_numbers<[1], [0], [0], [1], [0, 0, 1, 1], [], []>} : vector<2x32xf32>, vector<32x96xf32>, vector<2x96xf32> -> vector<2x96xf32>
    %369 = vector.broadcast %365 : vector<1x96xf32> to vector<2x96xf32>
    %370 = arith.addf %368, %369 : vector<2x96xf32>
    %371 = vector.extract_strided_slice %370 {offsets = [0, 0], sizes = [2, 32], strides = [1, 1]} : vector<2x96xf32> to vector<2x32xf32>
    %372 = vector.extract_strided_slice %370 {offsets = [0, 32], sizes = [2, 32], strides = [1, 1]} : vector<2x96xf32> to vector<2x32xf32>
    %373 = vector.extract_strided_slice %370 {offsets = [0, 64], sizes = [2, 32], strides = [1, 1]} : vector<2x96xf32> to vector<2x32xf32>
    %374 = tpu.transpose %372, [1, 0] : vector<2x32xf32> -> vector<32x2xf32>
    %cst_109 = arith.constant dense<0.000000e+00> : vector<32x32xf32>
    %375 = tpu.matmul %374, %371, %cst_109 {dimension_numbers = #tpu.dot_dimension_numbers<[1], [0], [0], [1], [0, 0, 1, 1], [], []>} : vector<32x2xf32>, vector<2x32xf32>, vector<32x32xf32> -> vector<32x32xf32>
    %cst_110 = arith.constant 0.176776692 : f32
    %376 = vector.broadcast %cst_110 : f32 to vector<32x32xf32>
    %377 = arith.mulf %375, %376 : vector<32x32xf32>
    %cst_111 = arith.constant dense<0xFF800000> : vector<32xf32>
    %378 = vector.multi_reduction <maximumf>, %377, %cst_111 [1] : vector<32x32xf32> to vector<32xf32>
    %379 = vector.shape_cast %378 : vector<32xf32> to vector<32x1xf32>
    %380 = vector.broadcast %379 : vector<32x1xf32> to vector<32x32xf32>
    %381 = arith.subf %377, %380 : vector<32x32xf32>
    %382 = math.exp %381 : vector<32x32xf32>
    %cst_112 = arith.constant dense<0.000000e+00> : vector<32xf32>
    %383 = vector.multi_reduction <add>, %382, %cst_112 [1] : vector<32x32xf32> to vector<32xf32>
    %384 = vector.shape_cast %383 : vector<32xf32> to vector<32x1xf32>
    %385 = vector.broadcast %384 : vector<32x1xf32> to vector<32x32xf32>
    %386 = arith.divf %382, %385 : vector<32x32xf32>
    %cst_113 = arith.constant dense<0.000000e+00> : vector<2x32xf32>
    %387 = tpu.matmul %373, %386, %cst_113 {dimension_numbers = #tpu.dot_dimension_numbers<[1], [0], [0], [1], [0, 0, 1, 1], [], []>} : vector<2x32xf32>, vector<32x32xf32>, vector<2x32xf32> -> vector<2x32xf32>
    %cst_114 = arith.constant dense<0.000000e+00> : vector<2x32xf32>
    %388 = tpu.matmul %387, %366, %cst_114 {dimension_numbers = #tpu.dot_dimension_numbers<[1], [0], [0], [1], [0, 0, 1, 1], [], []>} : vector<2x32xf32>, vector<32x32xf32>, vector<2x32xf32> -> vector<2x32xf32>
    %389 = vector.broadcast %367 : vector<1x32xf32> to vector<2x32xf32>
    %390 = arith.addf %388, %389 : vector<2x32xf32>
    %c0_115 = arith.constant 0 : index
    %c0_116 = arith.constant 0 : index
    %391 = vector.load %arg13[%c0_115, %c0_116] : memref<2x32xf32, #tpu.memory_space<vmem>>, vector<2x32xf32>
    tpu.vector_store %arg13[%c0_115, %c0_116], %390 {strides = array<i32>} : memref<2x32xf32, #tpu.memory_space<vmem>>, vector<2x32xf32>,
    return
  }
}

</mosaic_0001>

<bundles_post_ra>
// kernel: encoder_forward.1
= control target key start
LH: loop header
LB: loop body
LE: loop exit
PB: predicated region body
PF: predicated region fallthrough
CT: control target
= control target key end

     0   :  { %21 = vsyncpa [#allocation3], 0  ;;  %vm59_vm0 = vcmask 1043456   ;;  %vm52_vm1 = vcmask 31744   ;;  %v4613_v8 = vmov 0.0|0.0   ;;  %s5343_s0 = inlined_call_operand.vmem [shape: f32[16,4], index: 0, kind: input, shape index: {}]   ;;  %s5344_s1 = inlined_call_operand.vmem [shape: f32[2,2,32], index: 1, kind: input, shape index: {}]   ;;  %s5345_s2 = inlined_call_operand.vmem [shape: f32[2,2,32], index: 2, kind: input, shape index: {}]   ;;  %s5346_s3 = inlined_call_operand.vmem [shape: f32[4,128], index: 3, kind: input, shape index: {}]   ;;  %s5347_s4 = inlined_call_operand.vmem [shape: f32[32,128], index: 4, kind: input, shape index: {}]   ;;  %s5348_s5 = inlined_call_operand.vmem [shape: f32[32,128], index: 5, kind: input, shape index: {}]   ;;  %s5349_s6 = inlined_call_operand.vmem [shape: f32[32,128], index: 6, kind: input, shape index: {}]   ;;  %s5350_s7 = inlined_call_operand.vmem [shape: f32[8,32,32], index: 7, kind: input, shape index: {}]   ;;  %s5351_s8 = inlined_call_operand.vmem [shape: f32[1,32], index: 8, kind: input, shape index: {}]   ;;  %s5352_s9 = inlined_call_operand.vmem [shape: f32[32,96], index: 9, kind: input, shape index: {}]   ;;  %s5353_s10 = inlined_call_operand.vmem [shape: f32[1,96], index: 10, kind: input, shape index: {}]   ;;  %s5354_s11 = inlined_call_operand.vmem [shape: f32[32,32], index: 11, kind: input, shape index: {}]   ;;  %s5355_s12 = inlined_call_operand.vmem [shape: f32[1,32], index: 12, kind: input, shape index: {}]   ;;  %s5356_s13 = inlined_call_operand.hbm [shape: f32[2,32], index: 13, kind: output, shape index: {0}]   ;;  %s5357_s14 = inlined_call_operand.hbm [shape: f32[2,2,32], index: 14, kind: output, shape index: {1}]   ;;  %s5358_s15 = inlined_call_operand.hbm [shape: f32[2,2,32], index: 15, kind: output, shape index: {2}]  }
   0x1   :  { %v51_v0 = vld [vmem:[%s5346_s3] sm:$0xf]  ;;  %v50_v2 = vld [vmem:[%s5343_s0 + $0x8] sm:$0xff]  ;;  %v140_v5 = vld [vmem:[%s5347_s4 + $0x10] sm:$0xff]  ;;  %4172 = vmatprep.subr.bf16.mxu1 %v4613_v8 }
   0x2   :  { %v49_v1 = vld [vmem:[%s5343_s0] sm:$0xff]  ;;  %3750 = vmatprep.subr.msk.mxu0 %vm59_vm0, %v51_v0  ;;  %v139_v4 = vld [vmem:[%s5347_s4 + $0x8] sm:$0xff]  ;;  %v141_v7 = vld [vmem:[%s5347_s4 + $0x18] sm:$0xff] }
   0x3   :  { %3752 = vmatprep.mubr.msk.f32.mxu0 %vm52_vm1, %v49_v1  ;;  %v138_v3 = vld [vmem:[%s5347_s4] sm:$0xff]  ;;  %3751 = vmatpush3.msk.msra.mxu0 %vm59_vm0, %v51_v0 }
   0x4   :  { %v4721_v6 = vpack.c.bf16 %v139_v4, %v138_v3 }
   0x5   :  { %22 = vsyncpa [#allocation5], 0  ;;  %3753 = vmatmul.mubr.msk.f32.vlgmr.msra.gmra.mrb[0].mxu0 %vm52_vm1, %v50_v2  ;;  %4148 = vmatprep.subr.bf16.mxu0 %v4613_v8  ;;  %v4729_v9 = vpack.c.bf16 %v141_v7, %v140_v5  ;;  %vm4614_vm2 = vmmov 0   ;;  %v4615_v10 = vmov 0.0   ;;  %v142_v11 = vld [vmem:[%s5344_s1] sm:$0x3] }
   0x6   :  { %4150 = vmatpush3.bf16.msra.mxu0 %v4721_v6  ;;  %3763 = vmatprep.mubr.msk.f32.mxu0 %vm4614_vm2, %v4615_v10  ;;  %vm144_vm3 = vcmask 261120   ;;  %s4616_s16 = smov 32   ;;  %v143_v18 = vld [vmem:[%s5345_s2] sm:$0x3]  ;;  %s4617_s19 = smov 64   ;;  %vm2378_vm4 = vcmask 254976  }
   0x7   :  { %4151 = vmatprep.subr.bf16.mxu0 %v4613_v8  ;;  %4174 = vmatpush3.bf16.msra.mxu1 %v4721_v6  ;;  %vm3140_vm5 = vcmask 1041408   ;;  %vm3127_vm6 = vcmask 15360   ;;  %vm995_vm7 = vcmask 261126  }
   0x8   :  { %4175 = vmatprep.subr.bf16.mxu1 %v4613_v8  ;;  %3807 = vmatprep.mubr.msk.f32.mxu1 %vm4614_vm2, %v4615_v10 }
   0xa   :  { %4153 = vmatpush3.bf16.msra.mxu0 %v4729_v9 }
   0xb   :  { %4154 = vmatprep.subr.bf16.mxu0 %v4613_v8  ;;  %4177 = vmatpush3.bf16.msra.mxu1 %v4729_v9 }
   0xc   :  { %4184 = vmatprep.subr.bf16.mxu1 %v4613_v8 }
   0xd   :  { %3764 = vmatmul.mubr.msk.f32.vlgmr.msra.gmra.mrb[2].mxu0 %vm144_vm3, %v142_v11 }
   0xe   :  { %4156 = vmatpush3.bf16.msra.mxu0 %v4721_v6  ;;  %3774 = vmatprep.mubr.msk.f32.mxu0 %vm4614_vm2, %v4615_v10 }
   0xf   :  { %4157 = vmatprep.subr.bf16.mxu0 %v4613_v8 }
  0x12   :  { %4159 = vmatpush3.bf16.msra.mxu0 %v4729_v9 }
  0x13   :  { %4160 = vmatprep.subr.bf16.mxu0 %v4613_v8 }
  0xd8   :  { %v4752_v12 = vpop.f32.mrb[0].mxu0 }
  0xd9   :  { %v4754_v13 = vpop.f32.mrb[1].mxu0 }
  0xe0   :  { %v214_v14 = vpop.f32.mrb[2].mxu0 }
  0xe1   :  { %v218_v15 = vadd.f32 %v214_v14, %v4754_v13  ;;  %v3765_v16 = vpop.f32.mrb[3].mxu0 }
  0xe3   :  { %4399 = vtanh.f32 %v218_v15  ;;  %v3479_v19 = vmul.f32 -1.442695, %v218_v15 }
  0xe5   :  { %4401 = vpow2.f32 %v3479_v19 }
  0xed   :  { %v4400_v17 = vpop.eup %4399 }
  0xee   :  { %232 = vrot.lane.b32.xlu0 %v4400_v17, %s4616_s16 }
  0xef   :  { %v4402_v20 = vpop.eup %4401 }
  0xf0   :  { %v222_v21 = vadd.f32 1.0, %v4402_v20 }
  0xf2   :  { %227 = vrot.lane.b32.xlu0 %v143_v18, %s4616_s16  ;;  %4403 = vrcp.f32 %v222_v21 }
  0xfc   :  { %v4404_v22 = vpop.eup %4403 }
 0x160   :  { %v233_v23 = vpop.permute.xlu0 %232 }
 0x161   :  { %v235_v24 = vmul.f32 %v4404_v22, %v233_v23 }
 0x163   :  { %237 = vrot.lane.b32.xlu1 %v235_v24, %s4616_s16 }
 0x164   :  { %v228_v25 = vpop.permute.xlu0 %227 }
 0x165   :  { %v230_v26 = vmul.f32 %v4404_v22, %v228_v25 }
 0x1d5   :  { %v238_v27 = vpop.permute.xlu1 %237 }
 0x1d6   :  { %v240_v28 = vadd.f32 %v238_v27, %v230_v26 }
 0x1d8   :  { %4405 = vtanh.f32 %v240_v28  ;;  %v334_v44 = vrot.slane %v240_v28, 6 }
 0x1e2   :  { %v4406_v29 = vpop.eup %4405 }
 0x1e3   :  { %243 = vrot.lane.b32.xlu1 %v4406_v29, %s4616_s16 }
 0x255   :  { %v244_v30 = vpop.permute.xlu1 %243 }
 0x256   :  { %v246_v31 = vmul.f32 %v4404_v22, %v244_v30 }
 0x258   :  { %248 = vrot.lane.b32.xlu0 %v246_v31, %s4617_s19 }
 0x2ca   :  { %v4765_v32 = vpop.permute.xlu0 %248 }
 0x2cb   :  { %3775 = vmatmul.mubr.msk.f32.vlgmr.msra.gmra.mrb[4].mxu0 %vm144_vm3, %v4765_v32 }
 0x2cc   :  { %4162 = vmatpush3.bf16.msra.mxu0 %v4721_v6  ;;  %3785 = vmatprep.mubr.msk.f32.mxu0 %vm4614_vm2, %v4615_v10 }
 0x2cd   :  { %4163 = vmatprep.subr.bf16.mxu0 %v4613_v8 }
 0x2d0   :  { %4165 = vmatpush3.bf16.msra.mxu0 %v4729_v9 }
 0x2d1   :  { %4166 = vmatprep.subr.bf16.mxu0 %v4613_v8 }
 0x39e   :  { %v318_v33 = vpop.f32.mrb[4].mxu0 }
 0x39f   :  { %v323_v34 = vrot.slane %v318_v33, 6  ;;  %v3776_v35 = vpop.f32.mrb[5].mxu0 }
 0x3a1   :  { %v325_v36 = vadd.f32 %v323_v34, %v4754_v13 }
 0x3a3   :  { %4407 = vtanh.f32 %v325_v36  ;;  %v3481_v38 = vmul.f32 -1.442695, %v325_v36 }
 0x3a5   :  { %4409 = vpow2.f32 %v3481_v38 }
 0x3ad   :  { %v4408_v37 = vpop.eup %4407 }
 0x3ae   :  { %338 = vrot.lane.b32.xlu1 %v4408_v37, %s4616_s16 }
 0x3af   :  { %v4410_v39 = vpop.eup %4409 }
 0x3b0   :  { %v329_v40 = vadd.f32 1.0, %v4410_v39 }
 0x3b2   :  { %4411 = vrcp.f32 %v329_v40 }
 0x3bc   :  { %v4412_v41 = vpop.eup %4411 }
 0x3bd   :  { %v336_v45 = vmul.f32 %v4412_v41, %v334_v44 }
 0x420   :  { %v339_v42 = vpop.permute.xlu1 %338 }
 0x421   :  { %v341_v43 = vmul.f32 %v4412_v41, %v339_v42 }
 0x423   :  { %343 = vrot.lane.b32.xlu0 %v341_v43, %s4616_s16 }
 0x495   :  { %v344_v46 = vpop.permute.xlu0 %343 }
 0x496   :  { %v346_v47 = vadd.f32 %v344_v46, %v336_v45 }
 0x498   :  { %4413 = vtanh.f32 %v346_v47  ;;  %v441_v0 = vrot.slane %v346_v47, 6 }
 0x4a2   :  { %v4414_v48 = vpop.eup %4413 }
 0x4a3   :  { %349 = vrot.lane.b32.xlu1 %v4414_v48, %s4616_s16 }
 0x515   :  { %v350_v49 = vpop.permute.xlu1 %349 }
 0x516   :  { %v352_v50 = vmul.f32 %v4412_v41, %v350_v49 }
 0x518   :  { %v354_v51 = vrot.slane %v352_v50, 2 }
 0x51a   :  { %355 = vrot.lane.b32.xlu0 %v354_v51, %s4617_s19 }
 0x58c   :  { %v4780_v52 = vpop.permute.xlu0 %355 }
 0x58d   :  { %3786 = vmatmul.mubr.msk.f32.vlgmr.msra.gmra.mrb[6].mxu0 %vm144_vm3, %v4780_v52 }
 0x58e   :  { %4168 = vmatpush3.bf16.msra.mxu0 %v4721_v6  ;;  %3796 = vmatprep.mubr.msk.f32.mxu0 %vm4614_vm2, %v4615_v10 }
 0x58f   :  { %4169 = vmatprep.subr.bf16.mxu0 %v4613_v8 }
 0x592   :  { %4171 = vmatpush3.bf16.msra.mxu0 %v4729_v9 }
 0x593   :  { %4178 = vmatprep.subr.bf16.mxu0 %v4613_v8 }
 0x660   :  { %v425_v53 = vpop.f32.mrb[6].mxu0 }
 0x661   :  { %v430_v54 = vrot.slane %v425_v53, 4  ;;  %v3787_v55 = vpop.f32.mrb[7].mxu0 }
 0x663   :  { %v432_v56 = vadd.f32 %v430_v54, %v4754_v13 }
 0x665   :  { %4415 = vtanh.f32 %v432_v56  ;;  %v3483_v58 = vmul.f32 -1.442695, %v432_v56 }
 0x667   :  { %4417 = vpow2.f32 %v3483_v58 }
 0x66f   :  { %v4416_v57 = vpop.eup %4415 }
 0x670   :  { %445 = vrot.lane.b32.xlu1 %v4416_v57, %s4616_s16 }
 0x671   :  { %v4418_v59 = vpop.eup %4417 }
 0x672   :  { %v436_v60 = vadd.f32 1.0, %v4418_v59 }
 0x674   :  { %4419 = vrcp.f32 %v436_v60 }
 0x67e   :  { %v4420_v61 = vpop.eup %4419 }
 0x67f   :  { %v443_v1 = vmul.f32 %v4420_v61, %v441_v0 }
 0x6e2   :  { %v446_v62 = vpop.permute.xlu1 %445 }
 0x6e3   :  { %v448_v63 = vmul.f32 %v4420_v61, %v446_v62 }
 0x6e5   :  { %450 = vrot.lane.b32.xlu0 %v448_v63, %s4616_s16 }
 0x757   :  { %v451_v2 = vpop.permute.xlu0 %450 }
 0x758   :  { %v453_v3 = vadd.f32 %v451_v2, %v443_v1 }
 0x75a   :  { %4421 = vtanh.f32 %v453_v3  ;;  %v548_v26 = vrot.slane %v453_v3, 6 }
 0x764   :  { %v4422_v4 = vpop.eup %4421 }
 0x765   :  { %456 = vrot.lane.b32.xlu1 %v4422_v4, %s4616_s16 }
 0x7d7   :  { %v457_v5 = vpop.permute.xlu1 %456 }
 0x7d8   :  { %v459_v7 = vmul.f32 %v4420_v61, %v457_v5 }
 0x7da   :  { %v461_v11 = vrot.slane %v459_v7, 4 }
 0x7dc   :  { %462 = vrot.lane.b32.xlu0 %v461_v11, %s4617_s19  ;;  %v1002_v11 = vld [vmem:[%s5349_s6] sm:$0xff] }
 0x84e   :  { %v4795_v14 = vpop.permute.xlu0 %462 }
 0x84f   :  { %3797 = vmatmul.mubr.msk.f32.vlgmr.msra.gmra.mrb[8].mxu0 %vm144_vm3, %v4795_v14 }
 0x850   :  { %4180 = vmatpush3.bf16.msra.mxu0 %v4721_v6  ;;  %3818 = vmatprep.mubr.msk.f32.mxu0 %vm4614_vm2, %v4615_v10 }
 0x851   :  { %4181 = vmatprep.subr.bf16.mxu0 %v4613_v8 }
 0x854   :  { %4183 = vmatpush3.bf16.msra.mxu0 %v4729_v9 }
 0x855   :  { %4190 = vmatprep.subr.bf16.mxu0 %v4613_v8 }
 0x922   :  { %v532_v15 = vpop.f32.mrb[8].mxu0 }
 0x923   :  { %v537_v16 = vrot.slane %v532_v15, 2  ;;  %v3798_v17 = vpop.f32.mrb[9].mxu0  ;;  %v1003_v15 = vld [vmem:[%s5349_s6 + $0x8] sm:$0xff] }
 0x924   :  { %v1004_v17 = vld [vmem:[%s5349_s6 + $0x10] sm:$0xff] }
 0x925   :  { %v539_v18 = vadd.f32 %v537_v16, %v4754_v13  ;;  %v4849_v16 = vpack.c.bf16 %v1003_v15, %v1002_v11 }
 0x927   :  { %4423 = vtanh.f32 %v539_v18  ;;  %v3485_v20 = vmul.f32 -1.442695, %v539_v18  ;;  %v1005_v18 = vld [vmem:[%s5349_s6 + $0x18] sm:$0xff] }
 0x929   :  { %4425 = vpow2.f32 %v3485_v20  ;;  %v4862_v20 = vpack.c.bf16 %v1005_v18, %v1004_v17 }
 0x931   :  { %v4424_v19 = vpop.eup %4423 }
 0x932   :  { %552 = vrot.lane.b32.xlu1 %v4424_v19, %s4616_s16 }
 0x933   :  { %v4426_v21 = vpop.eup %4425 }
 0x934   :  { %v543_v22 = vadd.f32 1.0, %v4426_v21  ;;  %v1006_v21 = vld [vmem:[%s5348_s5] sm:$0xff] }
 0x936   :  { %4427 = vrcp.f32 %v543_v22  ;;  %v1007_v22 = vld [vmem:[%s5348_s5 + $0x8] sm:$0xff] }
 0x940   :  { %v4428_v23 = vpop.eup %4427 }
 0x941   :  { %v550_v27 = vmul.f32 %v4428_v23, %v548_v26  ;;  %v1009_v26 = vld [vmem:[%s5348_s5 + $0x18] sm:$0xff] }
 0x9a4   :  { %v553_v24 = vpop.permute.xlu1 %552 }
 0x9a5   :  { %v555_v25 = vmul.f32 %v4428_v23, %v553_v24  ;;  %v4877_v24 = vpack.c.bf16 %v1007_v22, %v1006_v21 }
 0x9a7   :  { %557 = vrot.lane.b32.xlu0 %v555_v25, %s4616_s16  ;;  %v1008_v25 = vld [vmem:[%s5348_s5 + $0x10] sm:$0xff] }
 0xa19   :  { %v558_v28 = vpop.permute.xlu0 %557 }
 0xa1a   :  { %v560_v29 = vadd.f32 %v558_v28, %v550_v27  ;;  %v4888_v27 = vpack.c.bf16 %v1009_v26, %v1008_v25 }
 0xa1c   :  { %4429 = vtanh.f32 %v560_v29  ;;  %v652_v45 = vrot.slane %v560_v29, 6 }
 0xa26   :  { %v4430_v13 = vpop.eup %4429 }
 0xa27   :  { %563 = vrot.lane.b32.xlu1 %v4430_v13, %s4616_s16 }
 0xa99   :  { %v564_v30 = vpop.permute.xlu1 %563 }
 0xa9a   :  { %v566_v31 = vmul.f32 %v4428_v23, %v564_v30  ;;  %v3494_v23 = vld [vmem:[%s5344_s1 + $0x2] sm:$0x3] }
 0xa9c   :  { %v568_v33 = vrot.slane %v566_v31, 6 }
 0xa9e   :  { %569 = vrot.lane.b32.xlu0 %v568_v33, %s4617_s19 }
 0xb10   :  { %v4810_v34 = vpop.permute.xlu0 %569 }
 0xb11   :  { %3808 = vmatmul.mubr.msk.f32.vlgmr.msra.gmra.mrb[0].mxu1 %vm144_vm3, %v4810_v34 }
 0xb12   :  { %4186 = vmatpush3.bf16.msra.mxu1 %v4721_v6  ;;  %3829 = vmatprep.mubr.msk.f32.mxu1 %vm4614_vm2, %v4615_v10 }
 0xb13   :  { %4187 = vmatprep.subr.bf16.mxu1 %v4613_v8 }
 0xb16   :  { %4189 = vmatpush3.bf16.msra.mxu1 %v4729_v9 }
 0xb17   :  { %4196 = vmatprep.subr.bf16.mxu1 %v4613_v8 }
 0xbe4   :  { %v639_v35 = vpop.f32.mrb[0].mxu1 }
 0xbe5   :  { %v643_v36 = vadd.f32 %v4752_v12, %v639_v35  ;;  %v3809_v37 = vpop.f32.mrb[1].mxu1 }
 0xbe7   :  { %4431 = vtanh.f32 %v643_v36  ;;  %v3487_v39 = vmul.f32 -1.442695, %v643_v36  ;;  %v3495_v36 = vld [vmem:[%s5345_s2 + $0x2] sm:$0x3]  ;;  %s4619_s2 = smov [#allocation4]  }
 0xbe8   :  { %s3445_s21 = sshll.u32 %s4619_s2, 4  ;;  %s3446_s21 = int_to_ptr.vmem [resolvable:$true] %s3445_s21 }
 0xbe9   :  { %4433 = vpow2.f32 %v3487_v39  ;;  %s4543_s22 = scalar_lea.vmem %s3446_s21, 64  ;;  %p4548_p1 = scmp.lt.s32.totalorder %s3446_s21, %s3446_s21 }
 0xbea   :  { %p4544_p0 = scmp.ne.s32.totalorder %s3446_s21, %s4543_s22  ;;  %p4549_p2 = scmp.lt.s32.totalorder %s4543_s22, %s4543_s22 }
 0xbec   :  { %p4550_p3 = por %p4549_p2, %p4548_p1 }
 0xbee   :  { %p4551_p4 = pnand %p4550_p3, %p4544_p0 }
 0xbf1   :  { %v4432_v38 = vpop.eup %4431 }
 0xbf2   :  { %656 = vrot.lane.b32.xlu1 %v4432_v38, %s4616_s16 }
 0xbf3   :  { %v4434_v40 = vpop.eup %4433 }
 0xbf4   :  { %v647_v41 = vadd.f32 1.0, %v4434_v40 }
 0xbf6   :  { %4435 = vrcp.f32 %v647_v41 }
 0xc00   :  { %v4436_v42 = vpop.eup %4435 }
 0xc01   :  { %v654_v46 = vmul.f32 %v4436_v42, %v652_v45 }
 0xc64   :  { %v657_v43 = vpop.permute.xlu1 %656 }
 0xc65   :  { %v659_v44 = vmul.f32 %v4436_v42, %v657_v43 }
 0xc67   :  { %661 = vrot.lane.b32.xlu0 %v659_v44, %s4616_s16 }
 0xcd9   :  { %v662_v47 = vpop.permute.xlu0 %661 }
 0xcda   :  { %v664_v48 = vadd.f32 %v662_v47, %v654_v46 }
 0xcdc   :  { %4437 = vtanh.f32 %v664_v48 }
 0xce6   :  { %v4438_v49 = vpop.eup %4437 }
 0xce7   :  { %667 = vrot.lane.b32.xlu1 %v4438_v49, %s4616_s16 }
 0xd59   :  { %v668_v50 = vpop.permute.xlu1 %667 }
 0xd5a   :  { %v670_v51 = vmul.f32 %v4436_v42, %v668_v50 }
 0xd5c   :  { %672 = vrot.lane.b32.xlu0 %v670_v51, %s4617_s19 }
 0xdce   :  { %v4825_v53 = vpop.permute.xlu0 %672 }
 0xdcf   :  { %3819 = vmatmul.mubr.msk.f32.vlgmr.msra.gmra.mrb[10].mxu0 %vm144_vm3, %v4825_v53 }
 0xdd0   :  { %4192 = vmatpush3.bf16.msra.mxu0 %v4721_v6  ;;  %3840 = vmatprep.mubr.msk.f32.mxu0 %vm4614_vm2, %v4615_v10 }
 0xdd1   :  { %4193 = vmatprep.subr.bf16.mxu0 %v4613_v8 }
 0xdd4   :  { %4195 = vmatpush3.bf16.msra.mxu0 %v4729_v9  ;;  %v758_v9 = vrot.slane %v664_v48, 6 }
 0xdd5   :  { %4208 = vmatprep.subr.bf16.mxu0 %v4613_v8 }
 0xea2   :  { %v742_v54 = vpop.f32.mrb[10].mxu0 }
 0xea3   :  { %v747_v55 = vrot.slane %v742_v54, 6  ;;  %v3820_v56 = vpop.f32.mrb[11].mxu0 }
 0xea5   :  { %v749_v57 = vadd.f32 %v4752_v12, %v747_v55 }
 0xea7   :  { %4439 = vtanh.f32 %v749_v57  ;;  %v3489_v59 = vmul.f32 -1.442695, %v749_v57 }
 0xea9   :  { %4441 = vpow2.f32 %v3489_v59 }
 0xeb1   :  { %v4440_v58 = vpop.eup %4439 }
 0xeb2   :  { %762 = vrot.lane.b32.xlu1 %v4440_v58, %s4616_s16 }
 0xeb3   :  { %v4442_v6 = vpop.eup %4441 }
 0xeb4   :  { %v753_v60 = vadd.f32 1.0, %v4442_v6 }
 0xeb6   :  { %4443 = vrcp.f32 %v753_v60 }
 0xec0   :  { %v4444_v61 = vpop.eup %4443 }
 0xec1   :  { %v760_v0 = vmul.f32 %v4444_v61, %v758_v9 }
 0xf24   :  { %v763_v62 = vpop.permute.xlu1 %762 }
 0xf25   :  { %v765_v63 = vmul.f32 %v4444_v61, %v763_v62 }
 0xf27   :  { %767 = vrot.lane.b32.xlu0 %v765_v63, %s4616_s16 }
 0xf99   :  { %v768_v1 = vpop.permute.xlu0 %767 }
 0xf9a   :  { %v4838_v2 = vadd.f32 %v768_v1, %v760_v0 }
 0xf9c   :  { %4445 = vtanh.f32 %v4838_v2  ;;  %v865_v49 = vrot.slane %v4838_v2, 6 }
 0xfa6   :  { %v4446_v3 = vpop.eup %4445 }
 0xfa7   :  { %773 = vrot.lane.b32.xlu1 %v4446_v3, %s4616_s16 }
0x1019   :  { %v774_v4 = vpop.permute.xlu1 %773 }
0x101a   :  { %v776_v5 = vmul.f32 %v4444_v61, %v774_v4 }
0x101c   :  { %v778_v7 = vrot.slane %v776_v5, 2 }
0x101e   :  { %779 = vrot.lane.b32.xlu0 %v778_v7, %s4617_s19 }
0x1090   :  { %v4857_v19 = vpop.permute.xlu0 %779 }
0x1091   :  { %3830 = vmatmul.mubr.msk.f32.vlgmr.msra.gmra.mrb[2].mxu1 %vm144_vm3, %v4857_v19 }
0x1092   :  { %4198 = vmatpush3.bf16.msra.mxu1 %v4849_v16  ;;  %3851 = vmatprep.mubr.msk.f32.mxu1 %vm4614_vm2, %v4615_v10 }
0x1093   :  { %4199 = vmatprep.subr.bf16.mxu1 %v4613_v8 }
0x1096   :  { %4201 = vmatpush3.bf16.msra.mxu1 %v4862_v20 }
0x1097   :  { %4202 = vmatprep.subr.bf16.mxu1 %v4613_v8 }
0x1099   :  { %3852 = vmatmul.mubr.msk.f32.vlgmr.msra.gmra.mrb[4].mxu1 %vm144_vm3, %v3494_v23 }
0x109a   :  { %4204 = vmatpush3.bf16.msra.mxu1 %v4877_v24  ;;  %3862 = vmatprep.mubr.msk.f32.mxu1 %vm4614_vm2, %v4615_v10 }
0x109b   :  { %4205 = vmatprep.subr.bf16.mxu1 %v4613_v8 }
0x109e   :  { %4207 = vmatpush3.bf16.msra.mxu1 %v4888_v27 }
0x109f   :  { %4220 = vmatprep.subr.bf16.mxu1 %v4613_v8 }
0x10a1   :  { %3863 = vmatmul.mubr.msk.f32.vlgmr.msra.gmra.mrb[4].mxu1 %vm144_vm3, %v4765_v32 }
0x10a2   :  { %4222 = vmatpush3.bf16.msra.mxu1 %v4849_v16  ;;  %3895 = vmatprep.mubr.msk.f32.mxu1 %vm4614_vm2, %v4615_v10 }
0x10a3   :  { %4223 = vmatprep.subr.bf16.mxu1 %v4613_v8 }
0x10a6   :  { %4225 = vmatpush3.bf16.msra.mxu1 %v4862_v20 }
0x10a7   :  { %4226 = vmatprep.subr.bf16.mxu1 %v4613_v8 }
0x1164   :  { %v849_v28 = vpop.f32.mrb[2].mxu1 }
0x1165   :  { %v854_v29 = vrot.slane %v849_v28, 4  ;;  %v3831_v13 = vpop.f32.mrb[3].mxu1 }
0x1167   :  { %v856_v30 = vadd.f32 %v4752_v12, %v854_v29 }
0x1169   :  { %4447 = vtanh.f32 %v856_v30  ;;  %v3491_v37 = vmul.f32 -1.442695, %v856_v30 }
0x1173   :  { %v4448_v31 = vpop.eup %4447 }
0x1174   :  { %v1153_v33 = vpop.f32.mrb[4].mxu1  ;;  %869 = vrot.lane.b32.xlu1 %v4448_v31, %s4616_s16 }
0x1175   :  { %4449 = vtanh.f32 %v1153_v33  ;;  %v3864_v32 = vpop.f32.mrb[5].mxu1  ;;  %v3498_v38 = vmul.f32 -1.442695, %v1153_v33 }
0x1176   :  { %4451 = vpow2.f32 %v3491_v37 }
0x1177   :  { %4453 = vpow2.f32 %v3498_v38 }
0x117f   :  { %v4450_v35 = vpop.eup %4449 }
0x1180   :  { %1170 = vrot.lane.b32.xlu0 %v4450_v35, %s4616_s16  ;;  %v4452_v39 = vpop.eup %4451 }
0x1181   :  { %v860_v40 = vadd.f32 1.0, %v4452_v39  ;;  %v4454_v41 = vpop.eup %4453 }
0x1182   :  { %v1160_v42 = vadd.f32 1.0, %v4454_v41 }
0x1183   :  { %4455 = vrcp.f32 %v860_v40 }
0x1184   :  { %1165 = vrot.lane.b32.xlu0 %v3495_v36, %s4616_s16  ;;  %4457 = vrcp.f32 %v1160_v42 }
0x118d   :  { %v4456_v43 = vpop.eup %4455 }
0x118e   :  { %v4458_v46 = vpop.eup %4457  ;;  %v867_v50 = vmul.f32 %v4456_v43, %v865_v49 }
0x11e6   :  { %v870_v44 = vpop.permute.xlu1 %869 }
0x11e7   :  { %v872_v45 = vmul.f32 %v4456_v43, %v870_v44 }
0x11e9   :  { %874 = vrot.lane.b32.xlu1 %v872_v45, %s4616_s16 }
0x11f2   :  { %v1171_v47 = vpop.permute.xlu0 %1170 }
0x11f3   :  { %v1173_v48 = vmul.f32 %v4458_v46, %v1171_v47 }
0x11f5   :  { %1175 = vrot.lane.b32.xlu1 %v1173_v48, %s4616_s16 }
0x11f6   :  { %v1166_v55 = vpop.permute.xlu0 %1165 }
0x11f7   :  { %v1168_v56 = vmul.f32 %v4458_v46, %v1166_v55 }
0x125b   :  { %v875_v51 = vpop.permute.xlu1 %874 }
0x125c   :  { %v4913_v54 = vadd.f32 %v875_v51, %v867_v50 }
0x125e   :  { %4459 = vtanh.f32 %v4913_v54 }
0x1267   :  { %v1176_v57 = vpop.permute.xlu1 %1175 }
0x1268   :  { %v4460_v58 = vpop.eup %4459  ;;  %v1178_v59 = vadd.f32 %v1176_v57, %v1168_v56 }
0x1269   :  { %880 = vrot.lane.b32.xlu0 %v4460_v58, %s4616_s16 }
0x126a   :  { %4461 = vtanh.f32 %v1178_v59 }
0x1274   :  { %v4462_v6 = vpop.eup %4461 }
0x1275   :  { %1181 = vrot.lane.b32.xlu1 %v4462_v6, %s4616_s16 }
0x12db   :  { %v881_v60 = vpop.permute.xlu0 %880 }
0x12dc   :  { %v883_v61 = vmul.f32 %v4456_v43, %v881_v60 }
0x12de   :  { %v885_v62 = vrot.slane %v883_v61, 4 }
0x12e0   :  { %886 = vrot.lane.b32.xlu0 %v885_v62, %s4617_s19 }
0x12e7   :  { %v1182_v63 = vpop.permute.xlu1 %1181 }
0x12e8   :  { %v1184_v9 = vmul.f32 %v4458_v46, %v1182_v63 }
0x12ea   :  { %1186 = vrot.lane.b32.xlu1 %v1184_v9, %s4617_s19 }
0x1352   :  { %v4920_v0 = vpop.permute.xlu0 %886 }
0x1353   :  { %3841 = vmatmul.mubr.msk.f32.vlgmr.msra.gmra.mrb[12].mxu0 %vm144_vm3, %v4920_v0 }
0x1354   :  { %4210 = vmatpush3.bf16.msra.mxu0 %v4849_v16  ;;  %3873 = vmatprep.mubr.msk.f32.mxu0 %vm4614_vm2, %v4615_v10 }
0x1355   :  { %4211 = vmatprep.subr.bf16.mxu0 %v4613_v8 }
0x1358   :  { %4213 = vmatpush3.bf16.msra.mxu0 %v4862_v20 }
0x1359   :  { %4214 = vmatprep.subr.bf16.mxu0 %v4613_v8 }
0x135c   :  { %v4930_v1 = vpop.permute.xlu1 %1186 }
0x135d   :  { %3874 = vmatmul.mubr.msk.f32.vlgmr.msra.gmra.mrb[14].mxu0 %vm144_vm3, %v4930_v1 }
0x135e   :  { %4216 = vmatpush3.bf16.msra.mxu0 %v4877_v24  ;;  %3884 = vmatprep.mubr.msk.f32.mxu0 %vm4614_vm2, %v4615_v10 }
0x135f   :  { %4217 = vmatprep.subr.bf16.mxu0 %v4613_v8 }
0x1362   :  { %4219 = vmatpush3.bf16.msra.mxu0 %v4888_v27 }
0x1363   :  { %4232 = vmatprep.subr.bf16.mxu0 %v4613_v8 }
0x1365   :  { %3885 = vmatmul.mubr.msk.f32.vlgmr.msra.gmra.mrb[14].mxu0 %vm144_vm3, %v4780_v52 }
0x1366   :  { %4234 = vmatpush3.bf16.msra.mxu0 %v4849_v16  ;;  %3917 = vmatprep.mubr.msk.f32.mxu0 %vm4614_vm2, %v4615_v10 }
0x1367   :  { %4235 = vmatprep.subr.bf16.mxu0 %v4613_v8 }
0x136a   :  { %4237 = vmatpush3.bf16.msra.mxu0 %v4862_v20 }
0x136b   :  { %4238 = vmatprep.subr.bf16.mxu0 %v4613_v8 }
0x1426   :  { %v956_v2 = vpop.f32.mrb[12].mxu0 }
0x1427   :  { %v961_v3 = vrot.slane %v956_v2, 2  ;;  %v3842_v4 = vpop.f32.mrb[13].mxu0 }
0x1429   :  { %v4949_v5 = vadd.f32 %v4752_v12, %v961_v3 }
0x1438   :  { %v1326_v7 = vpop.f32.mrb[14].mxu0 }
0x1439   :  { %4463 = vtanh.f32 %v1326_v7  ;;  %v3886_v52 = vpop.f32.mrb[15].mxu0  ;;  %v3501_v15 = vmul.f32 -1.442695, %v1326_v7 }
0x143b   :  { %4465 = vpow2.f32 %v3501_v15 }
0x1443   :  { %v4464_v11 = vpop.eup %4463 }
0x1444   :  { %1339 = vrot.lane.b32.xlu0 %v4464_v11, %s4616_s16 }
0x1445   :  { %v4466_v17 = vpop.eup %4465 }
0x1446   :  { %v1333_v18 = vadd.f32 1.0, %v4466_v17 }
0x1448   :  { %4467 = vrcp.f32 %v1333_v18 }
0x1452   :  { %v4468_v21 = vpop.eup %4467 }
0x1453   :  { %v1337_v25 = vmul.f32 %v4468_v21, %v1178_v59 }
0x14b6   :  { %v1340_v22 = vpop.permute.xlu0 %1339 }
0x14b7   :  { %v1342_v23 = vmul.f32 %v4468_v21, %v1340_v22 }
0x14b9   :  { %1344 = vrot.lane.b32.xlu1 %v1342_v23, %s4616_s16 }
0x152b   :  { %v1345_v26 = vpop.permute.xlu1 %1344 }
0x152c   :  { %v1347_v12 = vadd.f32 %v1345_v26, %v1337_v25 }
0x152e   :  { %4469 = vtanh.f32 %v1347_v12 }
0x1538   :  { %v4470_v28 = vpop.eup %4469 }
0x1539   :  { %1350 = vrot.lane.b32.xlu0 %v4470_v28, %s4616_s16 }
0x15ab   :  { %v1351_v29 = vpop.permute.xlu0 %1350 }
0x15ac   :  { %v1353_v13 = vmul.f32 %v4468_v21, %v1351_v29 }
0x15ae   :  { %1355 = vrot.lane.b32.xlu1 %v1353_v13, %s4617_s19 }
0x1620   :  { %v4955_v30 = vpop.permute.xlu1 %1355 }
0x1621   :  { %3896 = vmatmul.mubr.msk.f32.vlgmr.msra.gmra.mrb[6].mxu1 %vm144_vm3, %v4955_v30 }
0x1622   :  { %4228 = vmatpush3.bf16.msra.mxu1 %v4877_v24  ;;  %3906 = vmatprep.mubr.msk.f32.mxu1 %vm4614_vm2, %v4615_v10 }
0x1623   :  { %4229 = vmatprep.subr.bf16.mxu1 %v4613_v8 }
0x1626   :  { %4231 = vmatpush3.bf16.msra.mxu1 %v4888_v27 }
0x1627   :  { %4244 = vmatprep.subr.bf16.mxu1 %v4613_v8 }
0x1629   :  { %3907 = vmatmul.mubr.msk.f32.vlgmr.msra.gmra.mrb[6].mxu1 %vm144_vm3, %v4795_v14 }
0x162a   :  { %4246 = vmatpush3.bf16.msra.mxu1 %v4849_v16  ;;  %3939 = vmatprep.mubr.msk.f32.mxu1 %vm4614_vm2, %v4615_v10 }
0x162b   :  { %4247 = vmatprep.subr.bf16.mxu1 %v4613_v8 }
0x162e   :  { %4249 = vmatpush3.bf16.msra.mxu1 %v4862_v20 }
0x162f   :  { %4250 = vmatprep.subr.bf16.mxu1 %v4613_v8 }
0x16fc   :  { %v1495_v31 = vpop.f32.mrb[6].mxu1 }
0x16fd   :  { %4471 = vtanh.f32 %v1495_v31  ;;  %v3908_v33 = vpop.f32.mrb[7].mxu1  ;;  %v3504_v35 = vmul.f32 -1.442695, %v1495_v31 }
0x16ff   :  { %4473 = vpow2.f32 %v3504_v35 }
0x1707   :  { %v4472_v32 = vpop.eup %4471 }
0x1708   :  { %1508 = vrot.lane.b32.xlu0 %v4472_v32, %s4616_s16 }
0x1709   :  { %v4474_v14 = vpop.eup %4473 }
0x170a   :  { %v1502_v36 = vadd.f32 1.0, %v4474_v14 }
0x170c   :  { %4475 = vrcp.f32 %v1502_v36 }
0x1716   :  { %v4476_v37 = vpop.eup %4475 }
0x1717   :  { %v1506_v40 = vmul.f32 %v4476_v37, %v1347_v12 }
0x177a   :  { %v1509_v38 = vpop.permute.xlu0 %1508 }
0x177b   :  { %v1511_v39 = vmul.f32 %v4476_v37, %v1509_v38 }
0x177d   :  { %1513 = vrot.lane.b32.xlu1 %v1511_v39, %s4616_s16 }
0x17ef   :  { %v1514_v41 = vpop.permute.xlu1 %1513 }
0x17f0   :  { %v1516_v42 = vadd.f32 %v1514_v41, %v1506_v40  ;;  %v3493_v40 = vmul.f32 -1.442695, %v4949_v5 }
0x17f2   :  { %4477 = vtanh.f32 %v1516_v42 }
0x17fc   :  { %v4478_v43 = vpop.eup %4477 }
0x17fd   :  { %1519 = vrot.lane.b32.xlu0 %v4478_v43, %s4616_s16 }
0x186f   :  { %v1520_v44 = vpop.permute.xlu0 %1519 }
0x1870   :  { %v1522_v45 = vmul.f32 %v4476_v37, %v1520_v44  ;;  %v2388_v44 = vld [vmem:[%s5350_s7 + $0x8] sm:$0xff] }
0x1872   :  { %1524 = vrot.lane.b32.xlu1 %v1522_v45, %s4617_s19 }
0x18e4   :  { %v4977_v46 = vpop.permute.xlu1 %1524 }
0x18e5   :  { %3918 = vmatmul.mubr.msk.f32.vlgmr.msra.gmra.mrb[16].mxu0 %vm144_vm3, %v4977_v46 }
0x18e6   :  { %4240 = vmatpush3.bf16.msra.mxu0 %v4877_v24  ;;  %3928 = vmatprep.mubr.msk.f32.mxu0 %vm4614_vm2, %v4615_v10 }
0x18e7   :  { %4241 = vmatprep.subr.bf16.mxu0 %v4613_v8 }
0x18ea   :  { %4243 = vmatpush3.bf16.msra.mxu0 %v4888_v27 }
0x18eb   :  { %4256 = vmatprep.subr.bf16.mxu0 %v4613_v8 }
0x18ed   :  { %3929 = vmatmul.mubr.msk.f32.vlgmr.msra.gmra.mrb[16].mxu0 %vm144_vm3, %v4810_v34 }
0x18ee   :  { %4258 = vmatpush3.bf16.msra.mxu0 %v4849_v16  ;;  %3961 = vmatprep.mubr.msk.f32.mxu0 %vm4614_vm2, %v4615_v10 }
0x18ef   :  { %4259 = vmatprep.subr.bf16.mxu0 %v4613_v8 }
0x18f2   :  { %4261 = vmatpush3.bf16.msra.mxu0 %v4862_v20 }
0x18f3   :  { %4262 = vmatprep.subr.bf16.mxu0 %v4613_v8 }
0x19c0   :  { %v1664_v47 = vpop.f32.mrb[16].mxu0 }
0x19c1   :  { %4479 = vtanh.f32 %v1664_v47  ;;  %v3930_v48 = vpop.f32.mrb[17].mxu0  ;;  %v3507_v50 = vmul.f32 -1.442695, %v1664_v47 }
0x19c3   :  { %4481 = vpow2.f32 %v3507_v50  ;;  %v2389_v50 = vld [vmem:[%s5350_s7 + $0x10] sm:$0xff] }
0x19cb   :  { %v4480_v49 = vpop.eup %4479 }
0x19cc   :  { %1677 = vrot.lane.b32.xlu0 %v4480_v49, %s4616_s16 }
0x19cd   :  { %v4482_v34 = vpop.eup %4481 }
0x19ce   :  { %v1671_v51 = vadd.f32 1.0, %v4482_v34  ;;  %v2390_v34 = vld [vmem:[%s5350_s7 + $0x18] sm:$0xff] }
0x19d0   :  { %4483 = vrcp.f32 %v1671_v51  ;;  %v4296_v51 = vpack.c.bf16 %v2390_v34, %v2389_v50 }
0x19da   :  { %v4484_v55 = vpop.eup %4483 }
0x19db   :  { %v1675_v58 = vmul.f32 %v4484_v55, %v1516_v42 }
0x1a3e   :  { %v1678_v56 = vpop.permute.xlu0 %1677 }
0x1a3f   :  { %v1680_v57 = vmul.f32 %v4484_v55, %v1678_v56  ;;  %v3523_v56 = vld [vmem:[%s5350_s7 + $0x28] sm:$0xff] }
0x1a41   :  { %1682 = vrot.lane.b32.xlu1 %v1680_v57, %s4616_s16 }
0x1ab3   :  { %v1683_v59 = vpop.permute.xlu1 %1682 }
0x1ab4   :  { %v1685_v6 = vadd.f32 %v1683_v59, %v1675_v58  ;;  %v3525_v58 = vld [vmem:[%s5350_s7 + $0x38] sm:$0xff] }
0x1ab6   :  { %4485 = vtanh.f32 %v1685_v6 }
0x1ac0   :  { %v4486_v60 = vpop.eup %4485 }
0x1ac1   :  { %1688 = vrot.lane.b32.xlu0 %v4486_v60, %s4616_s16  ;;  %v3528_v60 = vld [vmem:[%s5350_s7 + $0x48] sm:$0xff] }
0x1b33   :  { %v1689_v61 = vpop.permute.xlu0 %1688 }
0x1b34   :  { %v1691_v62 = vmul.f32 %v4484_v55, %v1689_v61  ;;  %v3522_v55 = vld [vmem:[%s5350_s7 + $0x20] sm:$0xff] }
0x1b35   :  { %v4299_v57 = vpack.c.bf16 %v3523_v56, %v3522_v55 }
0x1b36   :  { %1693 = vrot.lane.b32.xlu1 %v1691_v62, %s4617_s19  ;;  %v3530_v62 = vld [vmem:[%s5350_s7 + $0x58] sm:$0xff] }
0x1ba8   :  { %v4999_v63 = vpop.permute.xlu1 %1693 }
0x1ba9   :  { %3940 = vmatmul.mubr.msk.f32.vlgmr.msra.gmra.mrb[8].mxu1 %vm144_vm3, %v4999_v63 }
0x1baa   :  { %4252 = vmatpush3.bf16.msra.mxu1 %v4877_v24  ;;  %3950 = vmatprep.mubr.msk.f32.mxu1 %vm4614_vm2, %v4615_v10 }
0x1bab   :  { %4253 = vmatprep.subr.bf16.mxu1 %v4613_v8 }
0x1bae   :  { %4255 = vmatpush3.bf16.msra.mxu1 %v4888_v27 }
0x1baf   :  { %4268 = vmatprep.subr.bf16.mxu1 %v4613_v8 }
0x1bb1   :  { %3951 = vmatmul.mubr.msk.f32.vlgmr.msra.gmra.mrb[8].mxu1 %vm144_vm3, %v4825_v53 }
0x1bb2   :  { %4270 = vmatpush3.bf16.msra.mxu1 %v4849_v16  ;;  %3983 = vmatprep.mubr.msk.f32.mxu1 %vm4614_vm2, %v4615_v10 }
0x1bb3   :  { %4271 = vmatprep.subr.bf16.mxu1 %v4613_v8 }
0x1bb6   :  { %4273 = vmatpush3.bf16.msra.mxu1 %v4862_v20 }
0x1bb7   :  { %4274 = vmatprep.subr.bf16.mxu1 %v4613_v8 }
0x1c84   :  { %v1833_v9 = vpop.f32.mrb[8].mxu1 }
0x1c85   :  { %4487 = vtanh.f32 %v1833_v9  ;;  %v3952_v2 = vpop.f32.mrb[9].mxu1  ;;  %v3510_v4 = vmul.f32 -1.442695, %v1833_v9 }
0x1c86   :  { %v3532_v2 = vld [vmem:[%s5350_s7 + $0x60] sm:$0xff] }
0x1c87   :  { %4489 = vpow2.f32 %v3510_v4 }
0x1c8f   :  { %v4488_v3 = vpop.eup %4487 }
0x1c90   :  { %1846 = vrot.lane.b32.xlu0 %v4488_v3, %s4616_s16  ;;  %v3533_v3 = vld [vmem:[%s5350_s7 + $0x68] sm:$0xff] }
0x1c91   :  { %v4490_v53 = vpop.eup %4489  ;;  %v4311_v4 = vpack.c.bf16 %v3533_v3, %v3532_v2  ;;  %v3553_v2 = vld [vmem:[%s5350_s7 + $0xe8] sm:$0xff]  ;;  %v3554_v3 = vld [vmem:[%s5350_s7 + $0xf0] sm:$0xff] }
0x1c92   :  { %v1840_v7 = vadd.f32 1.0, %v4490_v53  ;;  %v3535_v53 = vld [vmem:[%s5350_s7 + $0x78] sm:$0xff] }
0x1c94   :  { %4491 = vrcp.f32 %v1840_v7 }
0x1c9e   :  { %v4492_v52 = vpop.eup %4491 }
0x1c9f   :  { %v1844_v17 = vmul.f32 %v4492_v52, %v1685_v6  ;;  %v3527_v6 = vld [vmem:[%s5350_s7 + $0x40] sm:$0xff] }
0x1ca0   :  { %v4305_v61 = vpack.c.bf16 %v3528_v60, %v3527_v6 }
0x1d02   :  { %v1847_v11 = vpop.permute.xlu0 %1846 }
0x1d03   :  { %v1849_v15 = vmul.f32 %v4492_v52, %v1847_v11  ;;  %v3538_v11 = vld [vmem:[%s5350_s7 + $0x88] sm:$0xff] }
0x1d05   :  { %1851 = vrot.lane.b32.xlu1 %v1849_v15, %s4616_s16 }
0x1d77   :  { %v1852_v18 = vpop.permute.xlu1 %1851 }
0x1d78   :  { %v1854_v21 = vadd.f32 %v1852_v18, %v1844_v17  ;;  %v3540_v17 = vld [vmem:[%s5350_s7 + $0x98] sm:$0xff] }
0x1d7a   :  { %4493 = vtanh.f32 %v1854_v21 }
0x1d84   :  { %v4494_v22 = vpop.eup %4493 }
0x1d85   :  { %1857 = vrot.lane.b32.xlu0 %v4494_v22, %s4616_s16  ;;  %v3543_v22 = vld [vmem:[%s5350_s7 + $0xa8] sm:$0xff] }
0x1df7   :  { %v1858_v23 = vpop.permute.xlu0 %1857 }
0x1df8   :  { %v1860_v25 = vmul.f32 %v4492_v52, %v1858_v23  ;;  %v3537_v52 = vld [vmem:[%s5350_s7 + $0x80] sm:$0xff] }
0x1df9   :  { %v4317_v15 = vpack.c.bf16 %v3538_v11, %v3537_v52  ;;  %v3002_v52 = vld [vmem:[%s5352_s9] sm:$0xff]  ;;  %v3003_v11 = vld [vmem:[%s5352_s9 + $0x8] sm:$0xff] }
0x1dfa   :  { %1862 = vrot.lane.b32.xlu1 %v1860_v25, %s4617_s19  ;;  %v3545_v25 = vld [vmem:[%s5350_s7 + $0xb8] sm:$0xff] }
0x1e6c   :  { %v5021_v26 = vpop.permute.xlu1 %1862 }
0x1e6d   :  { %3962 = vmatmul.mubr.msk.f32.vlgmr.msra.gmra.mrb[18].mxu0 %vm144_vm3, %v5021_v26 }
0x1e6e   :  { %4264 = vmatpush3.bf16.msra.mxu0 %v4877_v24  ;;  %3972 = vmatprep.mubr.msk.f32.mxu0 %vm4614_vm2, %v4615_v10 }
0x1e6f   :  { %4265 = vmatprep.subr.bf16.mxu0 %v4613_v8 }
0x1e72   :  { %4267 = vmatpush3.bf16.msra.mxu0 %v4888_v27 }
0x1e73   :  { %4280 = vmatprep.subr.bf16.mxu0 %v4613_v8 }
0x1e75   :  { %3973 = vmatmul.mubr.msk.f32.vlgmr.msra.gmra.mrb[18].mxu0 %vm144_vm3, %v4857_v19 }
0x1e76   :  { %4282 = vmatpush3.bf16.msra.mxu0 %v4849_v16  ;;  %4005 = vmatprep.mubr.msk.f32.mxu0 %vm4614_vm2, %v4615_v10 }
0x1e77   :  { %4283 = vmatprep.subr.bf16.mxu0 %v4613_v8 }
0x1e7a   :  { %4285 = vmatpush3.bf16.msra.mxu0 %v4862_v20 }
0x1e7b   :  { %4286 = vmatprep.subr.bf16.mxu0 %v4613_v8 }
0x1f48   :  { %v2002_v12 = vpop.f32.mrb[18].mxu0 }
0x1f49   :  { %4495 = vtanh.f32 %v2002_v12  ;;  %v3974_v28 = vpop.f32.mrb[19].mxu0  ;;  %v3513_v13 = vmul.f32 -1.442695, %v2002_v12 }
0x1f4a   :  { %v972_v28 = vrot.slane %v4913_v54, 6 }
0x1f4b   :  { %4497 = vpow2.f32 %v3513_v13 }
0x1f53   :  { %v4496_v29 = vpop.eup %4495 }
0x1f54   :  { %2015 = vrot.lane.b32.xlu0 %v4496_v29, %s4616_s16 }
0x1f55   :  { %v4498_v19 = vpop.eup %4497 }
0x1f56   :  { %v2009_v31 = vadd.f32 1.0, %v4498_v19 }
0x1f58   :  { %4499 = vrcp.f32 %v2009_v31 }
0x1f62   :  { %v4500_v16 = vpop.eup %4499 }
0x1f63   :  { %v2013_v35 = vmul.f32 %v4500_v16, %v1854_v21  ;;  %v3542_v21 = vld [vmem:[%s5350_s7 + $0xa0] sm:$0xff] }
0x1f64   :  { %v4323_v23 = vpack.c.bf16 %v3543_v22, %v3542_v21  ;;  %v3004_v21 = vld [vmem:[%s5352_s9 + $0x10] sm:$0xff]  ;;  %v3005_v22 = vld [vmem:[%s5352_s9 + $0x18] sm:$0xff]  ;;  %s4618_s9 = smov 96  }
0x1fc6   :  { %v2016_v33 = vpop.permute.xlu0 %2015 }
0x1fc7   :  { %v2018_v32 = vmul.f32 %v4500_v16, %v2016_v33 }
0x1fc9   :  { %2020 = vrot.lane.b32.xlu1 %v2018_v32, %s4616_s16 }
0x203b   :  { %v2021_v20 = vpop.permute.xlu1 %2020 }
0x203c   :  { %v5041_v14 = vadd.f32 %v2021_v20, %v2013_v35 }
0x203e   :  { %4501 = vtanh.f32 %v5041_v14 }
0x203f   :  { %4503 = vtanh.f32 %v4949_v5  ;;  %v2387_v5 = vld [vmem:[%s5350_s7] sm:$0xff] }
0x2040   :  { %4505 = vpow2.f32 %v3493_v40  ;;  %v4293_v49 = vpack.c.bf16 %v2388_v44, %v2387_v5  ;;  %v3547_v5 = vld [vmem:[%s5350_s7 + $0xc0] sm:$0xff]  ;;  %v3548_v44 = vld [vmem:[%s5350_s7 + $0xc8] sm:$0xff] }
0x2048   :  { %v4502_v36 = vpop.eup %4501 }
0x2049   :  { %2026 = vrot.lane.b32.xlu0 %v4502_v36, %s4616_s16  ;;  %v4504_v39 = vpop.eup %4503 }
0x204a   :  { %v4506_v41 = vpop.eup %4505 }
0x204b   :  { %v967_v42 = vadd.f32 1.0, %v4506_v41 }
0x204d   :  { %4507 = vrcp.f32 %v967_v42 }
0x2057   :  { %v5063_v45 = vpop.eup %4507 }
0x20bb   :  { %v2027_v37 = vpop.permute.xlu0 %2026 }
0x20bc   :  { %v2029_v38 = vmul.f32 %v4500_v16, %v2027_v37 }
0x20be   :  { %2031 = vrot.lane.b32.xlu1 %v2029_v38, %s4617_s19 }
0x20c2   :  { %976 = vrot.lane.b32.xlu1 %v4504_v39, %s4616_s16 }
0x2130   :  { %v5049_v43 = vpop.permute.xlu1 %2031 }
0x2131   :  { %3984 = vmatmul.mubr.msk.f32.vlgmr.msra.gmra.mrb[10].mxu1 %vm144_vm3, %v5049_v43 }
0x2132   :  { %4276 = vmatpush3.bf16.msra.mxu1 %v4877_v24  ;;  %3994 = vmatprep.mubr.msk.f32.mxu1 %vm4614_vm2, %v4615_v10 }
0x2133   :  { %4277 = vmatprep.subr.bf16.mxu1 %v4613_v8 }
0x2134   :  { %v977_v47 = vpop.permute.xlu1 %976 }
0x2135   :  { %v979_v48 = vmul.f32 %v5063_v45, %v977_v47  ;;  %v4329_v47 = vpack.c.bf16 %v3548_v44, %v3547_v5 }
0x2136   :  { %4279 = vmatpush3.bf16.msra.mxu1 %v4888_v27 }
0x2137   :  { %981 = vrot.lane.b32.xlu1 %v979_v48, %s4616_s16  ;;  %4292 = vmatprep.subr.bf16.mxu1 %v4613_v8 }
0x2139   :  { %3995 = vmatmul.mubr.msk.f32.vlgmr.msra.gmra.mrb[10].mxu1 %vm144_vm3, %v4920_v0  ;;  %v3524_v0 = vld [vmem:[%s5350_s7 + $0x30] sm:$0xff] }
0x213a   :  { %4294 = vmatpush3.bf16.msra.mxu1 %v4293_v49  ;;  %4027 = vmatprep.mubr.msk.f32.mxu1 %vm4614_vm2, %v4615_v10  ;;  %v4302_v59 = vpack.c.bf16 %v3525_v58, %v3524_v0 }
0x213b   :  { %4295 = vmatprep.subr.bf16.mxu1 %v4613_v8 }
0x213e   :  { %4297 = vmatpush3.bf16.msra.mxu1 %v4296_v51 }
0x213f   :  { %4298 = vmatprep.subr.bf16.mxu1 %v4613_v8 }
0x2141   :  { %4028 = vmatmul.mubr.msk.f32.vlgmr.msra.gmra.mrb[12].mxu1 %vm144_vm3, %v4930_v1  ;;  %v3529_v1 = vld [vmem:[%s5350_s7 + $0x50] sm:$0xff] }
0x2142   :  { %4300 = vmatpush3.bf16.msra.mxu1 %v4299_v57  ;;  %4038 = vmatprep.mubr.msk.f32.mxu1 %vm4614_vm2, %v4615_v10  ;;  %v4308_v9 = vpack.c.bf16 %v3530_v62, %v3529_v1 }
0x2143   :  { %4301 = vmatprep.subr.bf16.mxu1 %v4613_v8 }
0x2146   :  { %4303 = vmatpush3.bf16.msra.mxu1 %v4302_v59 }
0x2147   :  { %4304 = vmatprep.subr.bf16.mxu1 %v4613_v8 }
0x2149   :  { %4039 = vmatmul.mubr.msk.f32.vlgmr.msra.gmra.mrb[12].mxu1 %vm144_vm3, %v4955_v30  ;;  %v3534_v30 = vld [vmem:[%s5350_s7 + $0x70] sm:$0xff] }
0x214a   :  { %4306 = vmatpush3.bf16.msra.mxu1 %v4305_v61  ;;  %4049 = vmatprep.mubr.msk.f32.mxu1 %vm4614_vm2, %v4615_v10  ;;  %v4314_v7 = vpack.c.bf16 %v3535_v53, %v3534_v30  ;;  %v3555_v30 = vld [vmem:[%s5350_s7 + $0xf8] sm:$0xff] }
0x214b   :  { %4307 = vmatprep.subr.bf16.mxu1 %v4613_v8  ;;  %v4338_v53 = vpack.c.bf16 %v3555_v30, %v3554_v3 }
0x214e   :  { %4309 = vmatpush3.bf16.msra.mxu1 %v4308_v9  ;;  %v3552_v9 = vld [vmem:[%s5350_s7 + $0xe0] sm:$0xff] }
0x214f   :  { %4310 = vmatprep.subr.bf16.mxu1 %v4613_v8 }
0x2151   :  { %4050 = vmatmul.mubr.msk.f32.vlgmr.msra.gmra.mrb[12].mxu1 %vm144_vm3, %v4977_v46  ;;  %v3539_v46 = vld [vmem:[%s5350_s7 + $0x90] sm:$0xff] }
0x2152   :  { %4312 = vmatpush3.bf16.msra.mxu1 %v4311_v4  ;;  %4060 = vmatprep.mubr.msk.f32.mxu1 %vm4614_vm2, %v4615_v10  ;;  %v4320_v18 = vpack.c.bf16 %v3540_v17, %v3539_v46  ;;  %v4335_v4 = vpack.c.bf16 %v3553_v2, %v3552_v9 }
0x2153   :  { %4313 = vmatprep.subr.bf16.mxu1 %v4613_v8 }
0x2156   :  { %4315 = vmatpush3.bf16.msra.mxu1 %v4314_v7 }
0x2157   :  { %4316 = vmatprep.subr.bf16.mxu1 %v4613_v8 }
0x2159   :  { %4061 = vmatmul.mubr.msk.f32.vlgmr.msra.gmra.mrb[12].mxu1 %vm144_vm3, %v4999_v63  ;;  %v3544_v63 = vld [vmem:[%s5350_s7 + $0xb0] sm:$0xff] }
0x215a   :  { %4318 = vmatpush3.bf16.msra.mxu1 %v4317_v15  ;;  %4071 = vmatprep.mubr.msk.f32.mxu1 %vm4614_vm2, %v4615_v10  ;;  %v4326_v12 = vpack.c.bf16 %v3545_v25, %v3544_v63  ;;  %v4341_v15 = vpack.c.bf16 %v3003_v11, %v3002_v52  ;;  %v3521_v63 = vld [vmem:[%s5351_s8] ss:$0 sm:$0xff] }
0x215b   :  { %4319 = vmatprep.subr.bf16.mxu1 %v4613_v8 }
0x215e   :  { %4321 = vmatpush3.bf16.msra.mxu1 %v4320_v18 }
0x215f   :  { %4322 = vmatprep.subr.bf16.mxu1 %v4613_v8 }
0x2161   :  { %4072 = vmatmul.mubr.msk.f32.vlgmr.msra.gmra.mrb[12].mxu1 %vm144_vm3, %v5021_v26  ;;  %v974_v26 = vmul.f32 %v5063_v45, %v972_v28 }
0x2162   :  { %4324 = vmatpush3.bf16.msra.mxu1 %v4323_v23  ;;  %4082 = vmatprep.mubr.msk.f32.mxu1 %vm4614_vm2, %v4615_v10  ;;  %v4344_v23 = vpack.c.bf16 %v3005_v22, %v3004_v21 }
0x2163   :  { %4325 = vmatprep.subr.bf16.mxu1 %v4613_v8 }
0x2166   :  { %4327 = vmatpush3.bf16.msra.mxu1 %v4326_v12 }
0x2167   :  { %4328 = vmatprep.subr.bf16.mxu1 %v4613_v8 }
0x2169   :  { %4083 = vmatmul.mubr.msk.f32.vlgmr.msra.gmra.mrb[12].mxu1 %vm144_vm3, %v5049_v43 }
0x216a   :  { %4093 = vmatprep.mubr.msk.f32.mxu1 %vm4614_vm2, %v4615_v10  ;;  %4330 = vmatpush3.bf16.msra.mxu1 %v4329_v47 }
0x216b   :  { %4331 = vmatprep.subr.bf16.mxu1 %v4613_v8 }
0x21a9   :  { %v982_v29 = vpop.permute.xlu1 %981 }
0x21aa   :  { %v5177_v13 = vadd.f32 %v982_v29, %v974_v26  ;;  %v3557_v26 = vld [vmem:[%s5353_s10] ss:$0 sm:$0xff] }
0x21ac   :  { %4509 = vtanh.f32 %v5177_v13 }
0x21b6   :  { %v4510_v19 = vpop.eup %4509 }
0x21b7   :  { %987 = vrot.lane.b32.xlu1 %v4510_v19, %s4616_s16 }
0x220c   :  { %v2171_v31 = vpop.f32.mrb[10].mxu1 }
0x220d   :  { %4511 = vtanh.f32 %v2171_v31  ;;  %v3996_v16 = vpop.f32.mrb[11].mxu1  ;;  %v3516_v20 = vmul.f32 -1.442695, %v2171_v31 }
0x220f   :  { %4513 = vpow2.f32 %v3516_v20 }
0x2217   :  { %v4512_v33 = vpop.eup %4511 }
0x2218   :  { %2184 = vrot.lane.b32.xlu0 %v4512_v33, %s4616_s16 }
0x2219   :  { %v4514_v36 = vpop.eup %4513 }
0x221a   :  { %v2178_v37 = vadd.f32 1.0, %v4514_v36 }
0x221c   :  { %4515 = vrcp.f32 %v2178_v37 }
0x2226   :  { %v4516_v38 = vpop.eup %4515 }
0x2227   :  { %v2182_v41 = vmul.f32 %v4516_v38, %v5041_v14  ;;  %v3550_v14 = vld [vmem:[%s5350_s7 + $0xd8] sm:$0xff] }
0x2229   :  { %v988_v32 = vpop.permute.xlu1 %987 }
0x222a   :  { %v5183_v35 = vmul.f32 %v5063_v45, %v988_v32  ;;  %v3549_v45 = vld [vmem:[%s5350_s7 + $0xd0] sm:$0xff] }
0x222b   :  { %v4332_v48 = vpack.c.bf16 %v3550_v14, %v3549_v45 }
0x222c   :  { %v2274_v54 = vrot.slane %v5183_v35, 6 }
0x222d   :  { %4333 = vmatpush3.bf16.msra.mxu1 %v4332_v48 }
0x222e   :  { %2275 = vrot.lane.b32.xlu1 %v2274_v54, %s4617_s19  ;;  %4334 = vmatprep.subr.bf16.mxu1 %v4613_v8 }
0x228a   :  { %v2185_v39 = vpop.permute.xlu0 %2184 }
0x228b   :  { %v2187_v40 = vmul.f32 %v4516_v38, %v2185_v39 }
0x228d   :  { %2189 = vrot.lane.b32.xlu0 %v2187_v40, %s4616_s16 }
0x22a0   :  { %v2276_v55 = vpop.permute.xlu1 %2275 }
0x22ff   :  { %v2190_v42 = vpop.permute.xlu0 %2189 }
0x2300   :  { %v2192_v43 = vadd.f32 %v2190_v42, %v2182_v41 }
0x2302   :  { %4517 = vtanh.f32 %v2192_v43 }
0x230c   :  { %v4518_v49 = vpop.eup %4517 }
0x230d   :  { %2195 = vrot.lane.b32.xlu0 %v4518_v49, %s4616_s16 }
0x237f   :  { %v2196_v50 = vpop.permute.xlu0 %2195 }
0x2380   :  { %v2198_v34 = vmul.f32 %v4516_v38, %v2196_v50 }
0x2382   :  { %2200 = vrot.lane.b32.xlu0 %v2198_v34, %s4617_s19 }
0x23f4   :  { %v2201_v51 = vpop.permute.xlu0 %2200 }
0x23f5   :  { %4006 = vmatmul.mubr.msk.f32.vlgmr.msra.gmra.mrb[20].mxu0 %vm144_vm3, %v2201_v51  ;;  %4094 = vmatmul.mubr.msk.f32.vlgmr.msra.gmra.mrb[12].mxu1 %vm144_vm3, %v2201_v51 }
0x23f6   :  { %4288 = vmatpush3.bf16.msra.mxu0 %v4877_v24  ;;  %4016 = vmatprep.mubr.msk.f32.mxu0 %vm4614_vm2, %v4615_v10 }
0x23f7   :  { %4289 = vmatprep.subr.bf16.mxu0 %v4613_v8  ;;  %4104 = vmatprep.mubr.msk.f32.mxu1 %vm4614_vm2, %v4615_v10 }
0x23f8   :  { %4336 = vmatpush3.bf16.msra.mxu1 %v4335_v4 }
0x23f9   :  { %4337 = vmatprep.subr.bf16.mxu1 %v4613_v8 }
0x23fa   :  { %4291 = vmatpush3.bf16.msra.mxu0 %v4888_v27 }
0x23fb   :  { %4340 = vmatprep.subr.bf16.mxu0 %v4613_v8 }
0x23fc   :  { %4339 = vmatpush3.bf16.msra.mxu1 %v4338_v53 }
0x23fd   :  { %4017 = vmatmul.mubr.msk.f32.vlgmr.msra.gmra.mrb[20].mxu0 %vm144_vm3, %v2276_v55 }
0x23fe   :  { %4115 = vmatprep.mubr.msk.f32.mxu0 %vm4614_vm2, %v4615_v10  ;;  %4342 = vmatpush3.bf16.msra.mxu0 %v4341_v15 }
0x23ff   :  { %4343 = vmatprep.subr.bf16.mxu0 %v4613_v8 }
0x2402   :  { %4345 = vmatpush3.bf16.msra.mxu0 %v4344_v23  ;;  %v3007_v23 = vld [vmem:[%s5354_s11] sm:$0xff] }
0x24d0   :  { %v2345_v56 = vpop.f32.mrb[20].mxu0 }
0x24d1   :  { %4519 = vtanh.f32 %v2345_v56  ;;  %v4018_v24 = vpop.f32.mrb[21].mxu0  ;;  %v3519_v0 = vmul.f32 -1.442695, %v2345_v56 }
0x24d3   :  { %4521 = vpow2.f32 %v3519_v0 }
0x24db   :  { %v4520_v57 = vpop.eup %4519 }
0x24dc   :  { %2358 = vrot.lane.b32.xlu0 %v4520_v57, %s4616_s16 }
0x24dd   :  { %v4522_v58 = vpop.eup %4521 }
0x24de   :  { %v2352_v59 = vadd.f32 1.0, %v4522_v58 }
0x24e0   :  { %4523 = vrcp.f32 %v2352_v59 }
0x24ea   :  { %v4524_v27 = vpop.eup %4523 }
0x24eb   :  { %v2356_v61 = vmul.f32 %v4524_v27, %v2192_v43 }
0x254e   :  { %v2359_v6 = vpop.permute.xlu0 %2358 }
0x254f   :  { %v2361_v60 = vmul.f32 %v4524_v27, %v2359_v6 }
0x2551   :  { %2363 = vrot.lane.b32.xlu1 %v2361_v60, %s4616_s16 }
0x25c3   :  { %v2364_v1 = vpop.permute.xlu1 %2363 }
0x25c4   :  { %v5220_v62 = vadd.f32 %v2364_v1, %v2356_v61 }
0x25c6   :  { %4525 = vtanh.f32 %v5220_v62 }
0x25d0   :  { %v4526_v7 = vpop.eup %4525 }
0x25d1   :  { %2369 = vrot.lane.b32.xlu0 %v4526_v7, %s4616_s16 }
0x2643   :  { %v2370_v46 = vpop.permute.xlu0 %2369 }
0x2644   :  { %v2372_v17 = vmul.f32 %v4524_v27, %v2370_v46 }
0x2646   :  { %2374 = vrot.lane.b32.xlu1 %v2372_v17, %s4617_s19 }
0x26b8   :  { %v2375_v18 = vpop.permute.xlu1 %2374 }
0x26b9   :  { %2379 = vst.msk [vmem:[#allocation4 + $0x2] sm:$0x3] %vm2378_vm4, %v2375_v18  ;;  %4105 = vmatmul.mubr.msk.f32.vlgmr.msra.gmra.mrb[12].mxu1 %vm144_vm3, %v2375_v18 }
0x278c   :  { %v2997_v25 = vpop.f32.mrb[12].mxu1 }
0x278d   :  { %v4358_v12 = vadd.f32 %v3521_v63, %v2997_v25  ;;  %v4106_v28 = vpop.f32.mrb[13].mxu1  ;;  %v3008_v63 = vld [vmem:[%s5354_s11 + $0x8] sm:$0xff] }
0x278e   :  { %v4353_v28 = vpack.c.bf16 %v3008_v63, %v3007_v23 }
0x278f   :  { %4116 = vmatmul.mubr.msk.f32.vlgmr.msra.gmra.mrb[22].mxu0 %vm144_vm3, %v4358_v12 }
0x2862   :  { %v3087_v29 = vpop.f32.mrb[22].mxu0 }
0x2863   :  { %v3088_v19 = vadd.f32 %v3557_v26, %v3087_v29  ;;  %v4117_v31 = vpop.f32.mrb[23].mxu0  ;;  %v3009_v26 = vld [vmem:[%s5354_s11 + $0x10] sm:$0xff]  ;;  %v3010_v29 = vld [vmem:[%s5354_s11 + $0x18] sm:$0xff] }
0x2865   :  { %3092 = vrot.lane.b32.xlu0 %v3088_v19, %s4618_s9  ;;  %4118 = vmatprep.subr.msk.mxu0 %vm3140_vm5, %v3088_v19 }
0x2866   :  { %4119 = vmatpush3.msk.msra.mxu0 %vm3140_vm5, %v3088_v19 }
0x2867   :  { %4346 = vmatprep.subr.bf16.mxu0 %v4613_v8 }
0x28d7   :  { %v3093_v16 = vpop.permute.xlu0 %3092 }
0x28d8   :  { %3095 = vxpose.xlu1.b32.start.end [1/1] (short) (narrow) %v3093_v16, 32 }
0x2958   :  { %v3111_v33 = vpop.trf.xlu1 }
0x2959   :  { %4120 = vmatprep.mubr.msk.f32.mxu0 %vm3127_vm6, %v3111_v33 }
0x295c   :  { %v3112_v32 = vpop.trf.xlu1 }
0x295d   :  { %4121 = vmatmul.mubr.msk.f32.vlgmr.msra.gmra.mrb[24].mxu0 %vm3127_vm6, %v3112_v32 }
0x2960   :  { %v3113_v54 = vpop.trf.xlu1 }
0x2961   :  { %4123 = vmatprep.mubr.msk.f32.mxu0 %vm3127_vm6, %v3113_v54 }
0x2964   :  { %v3114_v20 = vpop.trf.xlu1 }
0x2965   :  { %4124 = vmatmul.mubr.msk.f32.gmra.mrb[26].mxu0 %vm3127_vm6, %v3114_v20 }
0x2966   :  { %4134 = vmatprep.mubr.msk.f32.mxu0 %vm4614_vm2, %v4615_v10 }
0x2a30   :  { %v4122_v36 = vpop.f32.mrb[24].mxu0 }
0x2a31   :  { %v3229_v37 = vmul.f32 0.17677669, %v4122_v36  ;;  %v3209_v38 = vpop.f32.mrb[25].mxu0 }
0x2a32   :  { %v3228_v39 = vmul.f32 0.17677669, %v3209_v38 }
0x2a33   :  { %v3235_v40 = vsel %vm144_vm3, %v3229_v37, -inf }
0x2a34   :  { %3236 = vmax.xlane.f32.xlu0 %v3235_v40  ;;  %v3232_v41 = vsel %vm144_vm3, %v3228_v39, -inf }
0x2a38   :  { %3233 = vmax.xlane.f32.xlu0 %v3232_v41  ;;  %v4125_v42 = vpop.f32.mrb[26].mxu0 }
0x2a39   :  { %v3231_v43 = vmul.f32 0.17677669, %v4125_v42  ;;  %v3219_v5 = vpop.f32.mrb[27].mxu0 }
0x2a3a   :  { %v3230_v44 = vmul.f32 0.17677669, %v3219_v5 }
0x2a3b   :  { %v3241_v45 = vsel %vm144_vm3, %v3231_v43, -inf }
0x2a3c   :  { %3242 = vmax.xlane.f32.xlu1 %v3241_v45  ;;  %v3238_v47 = vsel %vm144_vm3, %v3230_v44, -inf }
0x2a3d   :  { %3239 = vmax.xlane.f32.xlu0 %v3238_v47 }
0x2ac1   :  { %v3237_v14 = vpop.xlane.xlu0 %3236 }
0x2ac2   :  { %v3245_v48 = vsub.f32 %v3229_v37, %v3237_v14 }
0x2ac4   :  { %v3250_v49 = vmul.f32 1.442695, %v3245_v48 }
0x2ac5   :  { %v3234_v50 = vpop.xlane.xlu0 %3233 }
0x2ac6   :  { %4527 = vpow2.f32 %v3250_v49  ;;  %v3244_v34 = vsub.f32 %v3228_v39, %v3234_v50 }
0x2ac8   :  { %v3248_v51 = vmul.f32 1.442695, %v3244_v34 }
0x2ac9   :  { %v3243_v55 = vpop.xlane.xlu1 %3242 }
0x2aca   :  { %4529 = vpow2.f32 %v3248_v51  ;;  %v3247_v56 = vsub.f32 %v3231_v43, %v3243_v55  ;;  %v3240_v24 = vpop.xlane.xlu0 %3239 }
0x2acb   :  { %v3246_v57 = vsub.f32 %v3230_v44, %v3240_v24 }
0x2acc   :  { %v3254_v0 = vmul.f32 1.442695, %v3247_v56 }
0x2acd   :  { %v3252_v58 = vmul.f32 1.442695, %v3246_v57 }
0x2acf   :  { %4531 = vpow2.f32 %v3252_v58 }
0x2ad0   :  { %v4528_v59 = vpop.eup %4527  ;;  %4533 = vpow2.f32 %v3254_v0 }
0x2ad1   :  { %v3259_v27 = vsel %vm144_vm3, %v4528_v59, 0.0 }
0x2ad2   :  { %3260 = vadd.xlane.f32.xlu0 %v3259_v27 }
0x2ad4   :  { %v4530_v6 = vpop.eup %4529 }
0x2ad5   :  { %v3256_v60 = vsel %vm144_vm3, %v4530_v6, 0.0 }
0x2ad6   :  { %3257 = vadd.xlane.f32.xlu0 %v3256_v60 }
0x2ad9   :  { %v4532_v61 = vpop.eup %4531 }
0x2ada   :  { %v3262_v1 = vsel %vm144_vm3, %v4532_v61, 0.0  ;;  %v4534_v9 = vpop.eup %4533 }
0x2adb   :  { %3263 = vadd.xlane.f32.xlu0 %v3262_v1  ;;  %v3265_v2 = vsel %vm144_vm3, %v4534_v9, 0.0 }
0x2adf   :  { %3266 = vadd.xlane.f32.xlu0 %v3265_v2 }
0x2af5   :  { %3276 = vrot.lane.b32.xlu0 %v3088_v19, %s4617_s19  ;;  %v4356_v19 = vpack.c.bf16 %v3010_v29, %v3009_v26 }
0x2af9   :  { %992 = vrot.lane.b32.xlu0 %v5183_v35, %s4617_s19 }
0x2afd   :  { %998 = vrot.lane.b32.xlu0 %v5177_v13, %s4618_s9 }
0x2b01   :  { %2381 = vrot.lane.b32.xlu0 %v5220_v62, %s4618_s9 }
0x2b5f   :  { %v3261_v3 = vpop.xlane.xlu0 %3260 }
0x2b60   :  { %4535 = vrcp.f32 %v3261_v3 }
0x2b63   :  { %v3258_v4 = vpop.xlane.xlu0 %3257 }
0x2b64   :  { %4537 = vrcp.f32 %v3258_v4 }
0x2b68   :  { %v3264_v30 = vpop.xlane.xlu0 %3263 }
0x2b69   :  { %4539 = vrcp.f32 %v3264_v30 }
0x2b6a   :  { %v4536_v53 = vpop.eup %4535 }
0x2b6b   :  { %v3271_v15 = vmul.f32 %v4536_v53, %v4528_v59 }
0x2b6c   :  { %v3267_v7 = vpop.xlane.xlu0 %3266 }
0x2b6d   :  { %4541 = vrcp.f32 %v3267_v7 }
0x2b6e   :  { %v4538_v52 = vpop.eup %4537 }
0x2b6f   :  { %v3269_v11 = vmul.f32 %v4538_v52, %v4530_v6 }
0x2b70   :  { %v3277_v46 = vpop.permute.xlu0 %3276 }
0x2b71   :  { %v4347_v35 = vpack.c.bf16 %v3271_v15, %v3269_v11 }
0x2b73   :  { %4348 = vmatpush3.bf16.msra.mxu0 %v4347_v35  ;;  %v4540_v62 = vpop.eup %4539 }
0x2b74   :  { %v993_v13 = vpop.permute.xlu0 %992  ;;  %4349 = vmatprep.subr.bf16.mxu0 %v4613_v8  ;;  %v3273_v21 = vmul.f32 %v4540_v62, %v4532_v61 }
0x2b75   :  { %996 = vst.msk [vmem:[#allocation4 - $0x6] sm:$0xc0] %vm995_vm7, %v993_v13 }
0x2b77   :  { %v4542_v17 = vpop.eup %4541 }
0x2b78   :  { %v999_v18 = vpop.permute.xlu0 %998  ;;  %v3275_v22 = vmul.f32 %v4542_v17, %v4534_v9 }
0x2b79   :  { %1001 = vst.msk [vmem:[#allocation6 - $0x6] sm:$0xc0] %vm995_vm7, %v999_v18 }
0x2b7a   :  { %v4350_v25 = vpack.c.bf16 %v3275_v22, %v3273_v21 }
0x2b7c   :  { %4351 = vmatpush3.bf16.msra.mxu0 %v4350_v25  ;;  %v2382_v12 = vpop.permute.xlu0 %2381 }
0x2b7d   :  { %2385 = vst.msk [vmem:[#allocation6 + $0x2] sm:$0x3] %vm2378_vm4, %v2382_v12  ;;  %4352 = vmatprep.subr.bf16.mxu0 %v4613_v8 }
0x2b7f   :  { %4135 = vmatmul.mubr.msk.f32.vlgmr.msra.gmra.mrb[28].mxu0 %vm144_vm3, %v3277_v46 }
0x2b80   :  { %4354 = vmatpush3.bf16.msra.mxu0 %v4353_v28  ;;  %4145 = vmatprep.mubr.msk.f32.mxu0 %vm4614_vm2, %v4615_v10 }
0x2b81   :  { %4355 = vmatprep.subr.bf16.mxu0 %v4613_v8 }
0x2b84   :  { %4357 = vmatpush3.bf16.msra.mxu0 %v4356_v19 }
0x2c52   :  { %v3346_v31 = vpop.f32.mrb[28].mxu0 }
0x2c53   :  { %v4136_v16 = vpop.f32.mrb[29].mxu0  ;;  %4146 = vmatmul.mubr.msk.f32.vlgmr.msra.gmra.mrb[30].mxu0 %vm144_vm3, %v3346_v31 }
0x2c54   :  { %4554 = shalt.err (!%p4551_p4)
}
0x2c55   :  { %s4555_s24 = scalar_lea.hbm %s5357_s14, 64 }
0x2c56   :  { %p4556_p5 = scmp.ne.s32.totalorder %s5357_s14, %s4555_s24  ;;  %p4559_p6 = scmp.lt.u32.totalorder %s4555_s24, %s5357_s14 }
0x2c58   :  { %p4561_p7 = pnand %p4559_p6, %p4556_p5 }
0x2c5a   :  { %4564 = shalt.err (!%p4561_p7)
}
0x2c5b   :  { %s4620_s3 = smov 2   ;;  %s4621_s6 = smov [#allocation6]  }
0x2c5c   :  { %3451 = dma.vmem_to_hbm [thread:$0]  %s3446_s21, 64, %s5357_s14, [#allocation5], %s4616_s16, %s4616_s16, %s4620_s3  }
0x2c5d   :  { %s3457_s30 = sshll.u32 %s4621_s6, 4  ;;  %s3458_s30 = int_to_ptr.vmem [resolvable:$true] %s3457_s30 }
0x2c5e   :  { %s4565_s0 = scalar_lea.vmem %s3458_s30, 64  ;;  %p4570_p9 = scmp.lt.s32.totalorder %s3458_s30, %s3458_s30 }
0x2c5f   :  { %p4566_p8 = scmp.ne.s32.totalorder %s3458_s30, %s4565_s0  ;;  %p4571_p10 = scmp.lt.s32.totalorder %s4565_s0, %s4565_s0 }
0x2c61   :  { %p4572_p11 = por %p4571_p10, %p4570_p9 }
0x2c63   :  { %p4573_p12 = pnand %p4572_p11, %p4566_p8 }
0x2c65   :  { %4576 = shalt.err (!%p4573_p12)
}
0x2c66   :  { %s4577_s8 = scalar_lea.hbm %s5358_s15, 64 }
0x2c67   :  { %p4578_p13 = scmp.ne.s32.totalorder %s5358_s15, %s4577_s8  ;;  %p4581_p0 = scmp.lt.u32.totalorder %s4577_s8, %s5358_s15 }
0x2c69   :  { %p4583_p1 = pnand %p4581_p0, %p4578_p13 }
0x2c6b   :  { %4586 = shalt.err (!%p4583_p1)
}
0x2c6c   :  { %3463 = dma.vmem_to_hbm [thread:$0]  %s3458_s30, 64, %s5358_s15, [#allocation5], %s4616_s16, %s4616_s16, %s4620_s3  }
0x2c6d   :  { %v3565_v8 = vld [vmem:[%s5355_s12] ss:$0 sm:$0xff]  ;;  %s4622_s2 = smov [#allocation2]  }
0x2c6e   :  { %s3436_s21 = sshll.u32 %s4622_s2, 4  ;;  %s3437_s21 = int_to_ptr.vmem [resolvable:$true] %s3436_s21 }
0x2c6f   :  { %s4587_s22 = scalar_lea.vmem %s3437_s21, 32  ;;  %p4592_p3 = scmp.lt.s32.totalorder %s3437_s21, %s3437_s21 }
0x2c70   :  { %p4588_p2 = scmp.ne.s32.totalorder %s3437_s21, %s4587_s22  ;;  %p4593_p4 = scmp.lt.s32.totalorder %s4587_s22, %s4587_s22 }
0x2c72   :  { %p4594_p5 = por %p4593_p4, %p4592_p3 }
0x2c74   :  { %p4595_p6 = pnand %p4594_p5, %p4588_p2 }
0x2d26   :  { %v3425_v10 = vpop.f32.mrb[30].mxu0 }
0x2d27   :  { %v3426_v33 = vadd.f32 %v3565_v8, %v3425_v10  ;;  %v4147_v32 = vpop.f32.mrb[31].mxu0 }
0x2d29   :  { %3429 = vst.msk [vmem:[#allocation2] sm:$0x3] %vm2378_vm4, %v3426_v33 }
0x2d2a   :  { %4598 = shalt.err (!%p4595_p6)
}
0x2d2b   :  { %s4599_s11 = scalar_lea.hbm %s5356_s13, 32 }
0x2d2c   :  { %p4600_p7 = scmp.ne.s32.totalorder %s5356_s13, %s4599_s11  ;;  %p4603_p8 = scmp.lt.u32.totalorder %s4599_s11, %s5356_s13 }
0x2d2e   :  { %p4605_p9 = pnand %p4603_p8, %p4600_p7 }
0x2d30   :  { %4608 = shalt.err (!%p4605_p9)
}
0x2d31   :  { %3439 = dma.vmem_to_hbm [thread:$0]  %s3437_s21, 32, %s5356_s13, [#allocation3]  }
0x2d32   :  { %4609 = dma.done.wait [#allocation3], 32  }
0x2d33   :  { %4610 = vsyncadd [#allocation3], 4294967264 }
0x2d34   :  { %4611 = dma.done.wait [#allocation5], 128  }
0x2d35   :  { %4612 = vsyncadd [#allocation5], 4294967168 }
0x2d36   :  { %3473 = vsyncpa [#allocation3], 1 }
0x2d37   :  { %3474 = vsyncpa [#allocation5], 1 }

</bundles_post_ra>
